<compile_context>
chip_gen: v7x
topology: tpu7x:2x2x1
jax: 0.10.0
libtpu: 0.0.40
codegen_flags: <defaults>
</compile_context>

<pallas_src>
import numpy as np
import jax
import jax.numpy as jnp
from jax import lax
from jax.experimental import pallas as pl
from jax.experimental.pallas import tpu as pltpu


def _round_up(x: int, mult: int) -> int:
    return ((x + mult - 1) // mult) * mult


def conv3x3_as_matrix(w, ns: int) -> np.ndarray:
    """Dense operator of a stride-1, padding-1 3x3 conv (PyTorch cross-correlation).

    w: (Cout, Cin, 3, 3). Returns M: (Cin*n, Cout*n), channel-major flat layout,
    so that y_flat = x_flat @ M equals conv2d(x, w, padding=1) flattened.
    """
    w = np.asarray(w, dtype=np.float32)
    cout, cin = w.shape[0], w.shape[1]
    n = ns * ns
    M = np.zeros((cin * n, cout * n), dtype=np.float32)
    for co in range(cout):
        for ci in range(cin):
            for ki in range(3):
                for kj in range(3):
                    wv = float(w[co, ci, ki, kj])
                    if wv == 0.0:
                        continue
                    for i in range(ns):
                        ii = i + ki - 1
                        if ii < 0 or ii >= ns:
                            continue
                        for j in range(ns):
                            jj = j + kj - 1
                            if jj < 0 or jj >= ns:
                                continue
                            M[ci * n + ii * ns + jj, co * n + i * ns + j] += wv
    return M


def make_damp_fused_kernel(*, eps: float, m_rows: int, residual: bool,
                           db: int, compute_dtype):
    """Fused D-AMP kernel: grid = (batch_tiles, num_projections)."""
    inv_eps = 1.0 / eps
    inv_m = 1.0 / m_rows

    def kernel(y_ref, A_ref, M1_ref, b1_ref, M2_ref, b2_ref, noise_ref,
               hist_ref, x_sc, z_sc):
        t = pl.program_id(1)

        @pl.when(t == 0)
        def _init():
            x_sc[...] = jnp.zeros_like(x_sc)
            z_sc[...] = y_ref[...]          # z_0 = y

        y = y_ref[...]
        A = A_ref[...]
        x = x_sc[...]
        z = z_sc[...]
        noise = noise_ref[...]              # (db, n_pad) f32, zero on padding

        # x_temp = x + (A^T z^T)^T = x + z @ A          (f32 MXU matmul)
        x_temp = x + jnp.dot(z, A, preferred_element_type=jnp.float32)
        pert = eps * noise                  # eps * b   (f32)

        # --- Denoiser: Conv(1->C,3x3,p=1) -> ReLU -> Conv(C->1,3x3,p=1) -----
        # One M1 matmul feeds both the clean pass and the perturbation pass.
        lhs1 = jnp.concatenate([x_temp, pert], axis=0).astype(compute_dtype)
        hh = jnp.dot(lhs1, M1_ref[...], preferred_element_type=jnp.float32)
        h_clean = hh[:db] + b1_ref[...]     # conv1(x_temp) + b1       (f32)
        delta_h = hh[db:]                   # conv1(eps*noise), no bias (f32)
        u_clean = jnp.maximum(h_clean, 0.0)
        u_pert = jnp.maximum(h_clean + delta_h, 0.0)

        # One M2 matmul for [clean ; (pert - clean)].
        lhs2 = jnp.concatenate([u_clean, u_pert - u_clean],
                               axis=0).astype(compute_dtype)
        oo = jnp.dot(lhs2, M2_ref[...], preferred_element_type=jnp.float32)
        x_new = oo[:db] + b2_ref[...]       # model(x_temp)
        diff = oo[db:]                      # model(x_pert) - model(x_temp)
        if residual:
            x_new = x_new + x_temp          # residual_connection branch
            diff = diff + pert              # (x_pert + model) - (x_temp + model)

        # Monte-Carlo divergence + Onsager correction (all f32).
        div = jnp.sum(noise * diff, axis=1, keepdims=True) * inv_eps   # (db, 1)
        onsager = z * (div * inv_m)

        # z_new = y - (A @ x_new^T)^T + OCT = y - x_new @ A^T + OCT
        # (contract n of x_new with n of A: no explicit A^T input needed)
        z_new = y - lax.dot_general(
            x_new, A, (((1,), (1,)), ((), ())),
            preferred_element_type=jnp.float32) + onsager

        x_sc[...] = x_new
        z_sc[...] = z_new
        hist_ref[...] = x_new

    return kernel


class DAMPPallas:
    """Unrolled D-AMP; denoiser = Conv2d(1,C,3,p=1) -> ReLU -> Conv2d(C,1,3,p=1)."""

    def __init__(self, A, eps, num_projections,
                 conv1_w, conv1_b, conv2_w, conv2_b,
                 residual=False, compute_dtype=jnp.bfloat16):
        A = np.asarray(A, dtype=np.float32)
        self.m, self.n = A.shape
        self.ns = int(round(np.sqrt(self.n)))
        assert self.ns * self.ns == self.n
        self.eps = float(eps)
        self.num_projections = int(num_projections)
        self.residual = bool(residual)
        self.compute_dtype = compute_dtype

        C = int(np.asarray(conv1_w).shape[0])
        n = self.n
        h = C * n

        # Lane-dense padding (128) for the measurement and feature dims.
        self.m_pad = _round_up(self.m, 128)
        self.n_pad = _round_up(n, 128)
        self.h_pad = _round_up(h, 128)

        A_pad = np.zeros((self.m_pad, self.n_pad), np.float32)
        A_pad[: self.m, :n] = A
        self.A = jnp.asarray(A_pad)                       # f32 (measurement path)

        # Lower the two 3x3 convs to their exact dense operators (setup glue).
        M1 = conv3x3_as_matrix(conv1_w, self.ns)          # (n, C*n)
        M2 = conv3x3_as_matrix(conv2_w, self.ns)          # (C*n, n)
        M1_pad = np.zeros((self.n_pad, self.h_pad), np.float32)
        M1_pad[:n, :h] = M1
        M2_pad = np.zeros((self.h_pad, self.n_pad), np.float32)
        M2_pad[:h, :n] = M2
        b1_pad = np.zeros((1, self.h_pad), np.float32)
        b1_pad[0, :h] = np.repeat(np.asarray(conv1_b, np.float32), n)
        b2_pad = np.zeros((1, self.n_pad), np.float32)
        b2_pad[0, :n] = np.repeat(np.asarray(conv2_b, np.float32), n)

        # bf16 denoiser weights: halves DMA/VMEM, MXU-native on v6e/v7x.
        self.M1 = jnp.asarray(M1_pad).astype(compute_dtype)
        self.M2 = jnp.asarray(M2_pad).astype(compute_dtype)
        self.b1 = jnp.asarray(b1_pad)                     # biases stay f32
        self.b2 = jnp.asarray(b2_pad)

    def forward(self, y, key=None, noise=None):
        d = int(y.shape[0])
        P = self.num_projections
        if noise is None:
            # torch.randn_like(x_new) equivalent: Gaussian noise per projection.
            noise = jax.random.normal(key, (P, d, self.n), dtype=jnp.float32)

        # Batch tiling: >=8 sublanes per tile, 'parallel' axis for megacore.
        db = min(_round_up(d, 8), 128)
        d_pad = _round_up(d, db)
        n_tiles = d_pad // db

        y_pad = jnp.zeros((d_pad, self.m_pad), jnp.float32)
        y_pad = y_pad.at[:d, : self.m].set(y.astype(jnp.float32))
        noise_pad = jnp.zeros((P, d_pad, self.n_pad), jnp.float32)
        noise_pad = noise_pad.at[:, :d, : self.n].set(noise.astype(jnp.float32))

        kernel = make_damp_fused_kernel(
            eps=self.eps, m_rows=self.m, residual=self.residual,
            db=db, compute_dtype=self.compute_dtype)

        const = lambda b, t: (0, 0)   # resident operands: loaded once
        grid_spec = pltpu.PrefetchScalarGridSpec(
            num_scalar_prefetch=0,
            grid=(n_tiles, P),
            in_specs=[
                pl.BlockSpec((db, self.m_pad), lambda b, t: (b, 0)),       # y
                pl.BlockSpec((self.m_pad, self.n_pad), const),             # A
                pl.BlockSpec((self.n_pad, self.h_pad), const),             # M1
                pl.BlockSpec((1, self.h_pad), const),                      # b1
                pl.BlockSpec((self.h_pad, self.n_pad), const),             # M2
                pl.BlockSpec((1, self.n_pad), const),                      # b2
                pl.BlockSpec((None, db, self.n_pad), lambda b, t: (t, b, 0)),  # noise
            ],
            out_specs=pl.BlockSpec((None, db, self.n_pad), lambda b, t: (t, b, 0)),
            scratch_shapes=[
                pltpu.VMEM((db, self.n_pad), jnp.float32),   # x carry
                pltpu.VMEM((db, self.m_pad), jnp.float32),   # z carry
            ],
        )

        hist = pl.pallas_call(
            kernel,
            out_shape=jax.ShapeDtypeStruct((P, d_pad, self.n_pad), jnp.float32),
            grid_spec=grid_spec,
            compiler_params=pltpu.CompilerParams(
                dimension_semantics=("parallel", "arbitrary"),
                vmem_limit_bytes=32 * 1024 * 1024,
            ),
        )(y_pad, self.A, self.M1, self.b1, self.M2, self.b2, noise_pad)

        hist = hist[:, :d, : self.n]
        return [hist[t] for t in range(P)]


if __name__ == "__main__":
    key = jax.random.PRNGKey(0)
    kA, kw1, kb1, kw2, kb2, ky, knoise = jax.random.split(key, 7)

    d, m, ns, C = 2, 64, 16, 4          # batch, measurements, image side, hidden channels
    n = ns * ns                          # 256
    eps = 1e-2
    num_projections = 3

    # Deterministic synthetic parameters (no checkpoint).
    A = jax.random.normal(kA, (m, n), dtype=jnp.float32) / jnp.sqrt(m)
    conv1_w = 0.1 * jax.random.normal(kw1, (C, 1, 3, 3), dtype=jnp.float32)
    conv1_b = 0.01 * jax.random.normal(kb1, (C,), dtype=jnp.float32)
    conv2_w = 0.1 * jax.random.normal(kw2, (1, C, 3, 3), dtype=jnp.float32)
    conv2_b = 0.01 * jax.random.normal(kb2, (1,), dtype=jnp.float32)

    y = jax.random.normal(ky, (d, m), dtype=jnp.float32)
    noise = jax.random.normal(knoise, (num_projections, d, n), dtype=jnp.float32)

    damp = DAMPPallas(np.asarray(A), eps, num_projections,
                      np.asarray(conv1_w), np.asarray(conv1_b),
                      np.asarray(conv2_w), np.asarray(conv2_b),
                      residual=False)

    history = damp.forward(y, noise=noise)
    x_final = jax.block_until_ready(history[-1])

    assert len(history) == num_projections
    assert x_final.shape == (d, n) and x_final.dtype == jnp.float32
    assert bool(jnp.all(jnp.isfinite(x_final)))

    # Loose sanity check against a pure-JAX f32 reference (same math, same noise).
    M1_f32 = jnp.asarray(conv3x3_as_matrix(np.asarray(conv1_w), ns))
    M2_f32 = jnp.asarray(conv3x3_as_matrix(np.asarray(conv2_w), ns))
    b1_f32 = jnp.asarray(np.repeat(np.asarray(conv1_b, np.float32), n)[None, :])
    b2_f32 = jnp.asarray(np.repeat(np.asarray(conv2_b, np.float32), n)[None, :])

    def denoise_ref(v):
        hh = jnp.maximum(v @ M1_f32 + b1_f32, 0.0)
        return hh @ M2_f32 + b2_f32

    x_r = jnp.zeros((d, n), jnp.float32)
    z_r = y
    for t in range(num_projections):
        x_temp = x_r + z_r @ A
        x_new = denoise_ref(x_temp)
        x_div = denoise_ref(x_temp + eps * noise[t])
        div = jnp.sum(noise[t] * (x_div - x_new), axis=1, keepdims=True) / eps
        z_r = y - x_new @ A.T + z_r * (div / m)
        x_r = x_new

    np.testing.assert_allclose(np.asarray(x_final), np.asarray(x_r),
                               rtol=0.1, atol=0.03)
    print("KERNEL_OK")
</pallas_src>

<mosaic_0001>
module attributes {stable_mosaic.version = 11 : i64} {
  func.func @kernel(%arg0: i32, %arg1: i32, %arg2: memref<8x128xf32, #tpu.memory_space<vmem>>, %arg3: memref<128x256xf32, #tpu.memory_space<vmem>>, %arg4: memref<256x1024xbf16, #tpu.memory_space<vmem>>, %arg5: memref<1x1024xf32, #tpu.memory_space<vmem>>, %arg6: memref<1024x256xbf16, #tpu.memory_space<vmem>>, %arg7: memref<1x256xf32, #tpu.memory_space<vmem>>, %arg8: memref<1x8x256xf32, #tpu.memory_space<vmem>>, %arg9: memref<1x8x256xf32, #tpu.memory_space<vmem>>, %arg10: memref<8x256xf32, #tpu.memory_space<vmem>>, %arg11: memref<8x128xf32, #tpu.memory_space<vmem>>) attributes {dimension_semantics = [#tpu.dimension_semantics<parallel>, #tpu.dimension_semantics<arbitrary>], iteration_bounds = array<i64: 1, 3>, scalar_prefetch = 0 : i64, scratch_operands = 2 : i64, tpu.core_type = #tpu.core_type<tc>, window_params = [{transform_indices = @transform_0, window_bounds = array<i64: 8, 128>}, {pipeline_mode = #tpu.pipeline_mode<synchronous>, transform_indices = @transform_1, window_bounds = array<i64: 128, 256>}, {pipeline_mode = #tpu.pipeline_mode<synchronous>, transform_indices = @transform_2, window_bounds = array<i64: 256, 1024>}, {pipeline_mode = #tpu.pipeline_mode<synchronous>, transform_indices = @transform_3, window_bounds = array<i64: 1, 1024>}, {pipeline_mode = #tpu.pipeline_mode<synchronous>, transform_indices = @transform_4, window_bounds = array<i64: 1024, 256>}, {pipeline_mode = #tpu.pipeline_mode<synchronous>, transform_indices = @transform_5, window_bounds = array<i64: 1, 256>}, {transform_indices = @transform_6, window_bounds = array<i64: 1, 8, 256>}, {transform_indices = @transform_7, window_bounds = array<i64: 1, 8, 256>}]} {
    %c0_i32 = arith.constant 0 : i32
    %0 = arith.cmpi eq, %arg1, %c0_i32 : i32
    %1 = arith.extui %0 : i1 to i32
    %c0_i32_0 = arith.constant 0 : i32
    %2 = arith.cmpi ne, %1, %c0_i32_0 : i32
    scf.if %2 {
      %cst_35 = arith.constant 0.000000e+00 : f32
      %54 = vector.broadcast %cst_35 : f32 to vector<8x256xf32>
      %c0_36 = arith.constant 0 : index
      %c0_37 = arith.constant 0 : index
      %55 = vector.load %arg10[%c0_36, %c0_37] : memref<8x256xf32, #tpu.memory_space<vmem>>, vector<8x256xf32>
      tpu.vector_store %arg10[%c0_36, %c0_37], %54 {strides = array<i32>} : memref<8x256xf32, #tpu.memory_space<vmem>>, vector<8x256xf32>,
      %c0_38 = arith.constant 0 : index
      %c0_39 = arith.constant 0 : index
      %56 = vector.load %arg2[%c0_38, %c0_39] : memref<8x128xf32, #tpu.memory_space<vmem>>, vector<8x128xf32>
      %c0_40 = arith.constant 0 : index
      %c0_41 = arith.constant 0 : index
      %57 = vector.load %arg11[%c0_40, %c0_41] : memref<8x128xf32, #tpu.memory_space<vmem>>, vector<8x128xf32>
      tpu.vector_store %arg11[%c0_40, %c0_41], %56 {strides = array<i32>} : memref<8x128xf32, #tpu.memory_space<vmem>>, vector<8x128xf32>,
    } else {
    }
    %c0 = arith.constant 0 : index
    %c0_1 = arith.constant 0 : index
    %3 = vector.load %arg2[%c0, %c0_1] : memref<8x128xf32, #tpu.memory_space<vmem>>, vector<8x128xf32>
    %c0_2 = arith.constant 0 : index
    %c0_3 = arith.constant 0 : index
    %4 = vector.load %arg3[%c0_2, %c0_3] : memref<128x256xf32, #tpu.memory_space<vmem>>, vector<128x256xf32>
    %c0_4 = arith.constant 0 : index
    %c0_5 = arith.constant 0 : index
    %5 = vector.load %arg10[%c0_4, %c0_5] : memref<8x256xf32, #tpu.memory_space<vmem>>, vector<8x256xf32>
    %c0_6 = arith.constant 0 : index
    %c0_7 = arith.constant 0 : index
    %6 = vector.load %arg11[%c0_6, %c0_7] : memref<8x128xf32, #tpu.memory_space<vmem>>, vector<8x128xf32>
    %c0_8 = arith.constant 0 : index
    %c0_9 = arith.constant 0 : index
    %c0_10 = arith.constant 0 : index
    %7 = vector.load %arg8[%c0_8, %c0_9, %c0_10] : memref<1x8x256xf32, #tpu.memory_space<vmem>>, vector<1x8x256xf32>
    %8 = vector.shape_cast %7 : vector<1x8x256xf32> to vector<8x256xf32>
    %cst = arith.constant dense<0.000000e+00> : vector<8x256xf32>
    %9 = tpu.matmul %6, %4, %cst {dimension_numbers = #tpu.dot_dimension_numbers<[1], [0], [0], [1], [0, 0, 1, 1], [], []>} : vector<8x128xf32>, vector<128x256xf32>, vector<8x256xf32> -> vector<8x256xf32>
    %10 = arith.addf %5, %9 : vector<8x256xf32>
    %cst_11 = arith.constant 0.00999999977 : f32
    %11 = vector.broadcast %cst_11 : f32 to vector<8x256xf32>
    %12 = arith.mulf %11, %8 : vector<8x256xf32>
    %13 = tpu.concatenate %10, %12 in 0 : vector<8x256xf32>, vector<8x256xf32> -> vector<16x256xf32>
    %14 = arith.truncf %13 : vector<16x256xf32> to vector<16x256xbf16>
    %c0_12 = arith.constant 0 : index
    %c0_13 = arith.constant 0 : index
    %15 = vector.load %arg4[%c0_12, %c0_13] : memref<256x1024xbf16, #tpu.memory_space<vmem>>, vector<256x1024xbf16>
    %cst_14 = arith.constant dense<0.000000e+00> : vector<16x1024xf32>
    %16 = tpu.matmul %14, %15, %cst_14 {dimension_numbers = #tpu.dot_dimension_numbers<[1], [0], [0], [1], [0, 0, 1, 1], [], []>} : vector<16x256xbf16>, vector<256x1024xbf16>, vector<16x1024xf32> -> vector<16x1024xf32>
    %17 = vector.extract_strided_slice %16 {offsets = [0, 0], sizes = [8, 1024], strides = [1, 1]} : vector<16x1024xf32> to vector<8x1024xf32>
    %c0_15 = arith.constant 0 : index
    %c0_16 = arith.constant 0 : index
    %18 = vector.load %arg5[%c0_15, %c0_16] : memref<1x1024xf32, #tpu.memory_space<vmem>>, vector<1x1024xf32>
    %19 = vector.broadcast %18 : vector<1x1024xf32> to vector<8x1024xf32>
    %20 = arith.addf %17, %19 : vector<8x1024xf32>
    %21 = vector.extract_strided_slice %16 {offsets = [8, 0], sizes = [8, 1024], strides = [1, 1]} : vector<16x1024xf32> to vector<8x1024xf32>
    %cst_17 = arith.constant 0.000000e+00 : f32
    %22 = vector.broadcast %cst_17 : f32 to vector<8x1024xf32>
    %23 = arith.maximumf %20, %22 : vector<8x1024xf32>
    %24 = arith.addf %20, %21 : vector<8x1024xf32>
    %cst_18 = arith.constant 0.000000e+00 : f32
    %25 = vector.broadcast %cst_18 : f32 to vector<8x1024xf32>
    %26 = arith.maximumf %24, %25 : vector<8x1024xf32>
    %27 = arith.subf %26, %23 : vector<8x1024xf32>
    %28 = tpu.concatenate %23, %27 in 0 : vector<8x1024xf32>, vector<8x1024xf32> -> vector<16x1024xf32>
    %29 = arith.truncf %28 : vector<16x1024xf32> to vector<16x1024xbf16>
    %c0_19 = arith.constant 0 : index
    %c0_20 = arith.constant 0 : index
    %30 = vector.load %arg6[%c0_19, %c0_20] : memref<1024x256xbf16, #tpu.memory_space<vmem>>, vector<1024x256xbf16>
    %cst_21 = arith.constant dense<0.000000e+00> : vector<16x256xf32>
    %31 = tpu.matmul %29, %30, %cst_21 {dimension_numbers = #tpu.dot_dimension_numbers<[1], [0], [0], [1], [0, 0, 1, 1], [], []>} : vector<16x1024xbf16>, vector<1024x256xbf16>, vector<16x256xf32> -> vector<16x256xf32>
    %32 = vector.extract_strided_slice %31 {offsets = [0, 0], sizes = [8, 256], strides = [1, 1]} : vector<16x256xf32> to vector<8x256xf32>
    %c0_22 = arith.constant 0 : index
    %c0_23 = arith.constant 0 : index
    %33 = vector.load %arg7[%c0_22, %c0_23] : memref<1x256xf32, #tpu.memory_space<vmem>>, vector<1x256xf32>
    %34 = vector.broadcast %33 : vector<1x256xf32> to vector<8x256xf32>
    %35 = arith.addf %32, %34 : vector<8x256xf32>
    %36 = vector.extract_strided_slice %31 {offsets = [8, 0], sizes = [8, 256], strides = [1, 1]} : vector<16x256xf32> to vector<8x256xf32>
    %37 = arith.mulf %8, %36 : vector<8x256xf32>
    %cst_24 = arith.constant dense<0.000000e+00> : vector<8xf32>
    %38 = vector.multi_reduction <add>, %37, %cst_24 [1] : vector<8x256xf32> to vector<8xf32>
    %39 = vector.shape_cast %38 : vector<8xf32> to vector<8x1xf32>
    %cst_25 = arith.constant 1.000000e+02 : f32
    %40 = vector.broadcast %cst_25 : f32 to vector<8x1xf32>
    %41 = arith.mulf %39, %40 : vector<8x1xf32>
    %cst_26 = arith.constant 1.562500e-02 : f32
    %42 = vector.broadcast %cst_26 : f32 to vector<8x1xf32>
    %43 = arith.mulf %41, %42 : vector<8x1xf32>
    %44 = vector.broadcast %43 : vector<8x1xf32> to vector<8x128xf32>
    %45 = arith.mulf %6, %44 : vector<8x128xf32>
    %cst_27 = arith.constant dense<0.000000e+00> : vector<8x128xf32>
    %46 = tpu.matmul %35, %4, %cst_27 {dimension_numbers = #tpu.dot_dimension_numbers<[1], [1], [0], [0], [0, 0, 1, 0], [], []>} : vector<8x256xf32>, vector<128x256xf32>, vector<8x128xf32> -> vector<8x128xf32>
    %47 = arith.subf %3, %46 : vector<8x128xf32>
    %48 = arith.addf %47, %45 : vector<8x128xf32>
    %c0_28 = arith.constant 0 : index
    %c0_29 = arith.constant 0 : index
    %49 = vector.load %arg10[%c0_28, %c0_29] : memref<8x256xf32, #tpu.memory_space<vmem>>, vector<8x256xf32>
    tpu.vector_store %arg10[%c0_28, %c0_29], %35 {strides = array<i32>} : memref<8x256xf32, #tpu.memory_space<vmem>>, vector<8x256xf32>,
    %c0_30 = arith.constant 0 : index
    %c0_31 = arith.constant 0 : index
    %50 = vector.load %arg11[%c0_30, %c0_31] : memref<8x128xf32, #tpu.memory_space<vmem>>, vector<8x128xf32>
    tpu.vector_store %arg11[%c0_30, %c0_31], %48 {strides = array<i32>} : memref<8x128xf32, #tpu.memory_space<vmem>>, vector<8x128xf32>,
    %c0_32 = arith.constant 0 : index
    %c0_33 = arith.constant 0 : index
    %c0_34 = arith.constant 0 : index
    %51 = vector.load %arg9[%c0_32, %c0_33, %c0_34] : memref<1x8x256xf32, #tpu.memory_space<vmem>>, vector<1x8x256xf32>
    %52 = vector.shape_cast %51 : vector<1x8x256xf32> to vector<8x256xf32>
    %53 = vector.shape_cast %35 : vector<8x256xf32> to vector<1x8x256xf32>
    tpu.vector_store %arg9[%c0_32, %c0_33, %c0_34], %53 {strides = array<i32>} : memref<1x8x256xf32, #tpu.memory_space<vmem>>, vector<1x8x256xf32>,
    return
  }
  func.func @transform_0(%arg0: i32, %arg1: i32) -> (i32, i32) {
    %c0_i32 = arith.constant 0 : i32
    %c0_i32_0 = arith.constant 0 : i32
    return %arg0, %c0_i32 : i32, i32
  }
  func.func @transform_1(%arg0: i32, %arg1: i32) -> (i32, i32) {
    %c0_i32 = arith.constant 0 : i32
    %c0_i32_0 = arith.constant 0 : i32
    %c0_i32_1 = arith.constant 0 : i32
    return %c0_i32, %c0_i32_0 : i32, i32
  }
  func.func @transform_2(%arg0: i32, %arg1: i32) -> (i32, i32) {
    %c0_i32 = arith.constant 0 : i32
    %c0_i32_0 = arith.constant 0 : i32
    %c0_i32_1 = arith.constant 0 : i32
    return %c0_i32, %c0_i32_0 : i32, i32
  }
  func.func @transform_3(%arg0: i32, %arg1: i32) -> (i32, i32) {
    %c0_i32 = arith.constant 0 : i32
    %c0_i32_0 = arith.constant 0 : i32
    %c0_i32_1 = arith.constant 0 : i32
    return %c0_i32, %c0_i32_0 : i32, i32
  }
  func.func @transform_4(%arg0: i32, %arg1: i32) -> (i32, i32) {
    %c0_i32 = arith.constant 0 : i32
    %c0_i32_0 = arith.constant 0 : i32
    %c0_i32_1 = arith.constant 0 : i32
    return %c0_i32, %c0_i32_0 : i32, i32
  }
  func.func @transform_5(%arg0: i32, %arg1: i32) -> (i32, i32) {
    %c0_i32 = arith.constant 0 : i32
    %c0_i32_0 = arith.constant 0 : i32
    %c0_i32_1 = arith.constant 0 : i32
    return %c0_i32, %c0_i32_0 : i32, i32
  }
  func.func @transform_6(%arg0: i32, %arg1: i32) -> (i32, i32, i32) {
    %c0_i32 = arith.constant 0 : i32
    %c0_i32_0 = arith.constant 0 : i32
    return %arg1, %arg0, %c0_i32 : i32, i32, i32
  }
  func.func @transform_7(%arg0: i32, %arg1: i32) -> (i32, i32, i32) {
    %c0_i32 = arith.constant 0 : i32
    %c0_i32_0 = arith.constant 0 : i32
    return %arg1, %arg0, %c0_i32 : i32, i32, i32
  }
}

</mosaic_0001>

<bundles_post_ra>
// kernel: tpu_custom_call.1
= control target key start
LH: loop header
LB: loop body
LE: loop exit
PB: predicated region body
PF: predicated region fallthrough
CT: control target
= control target key end

     0   :  { %s4077_s0 = inlined_call_operand.hbm [shape: f32[8,128], index: 0, kind: input, shape index: {}]   ;;  %s4078_s1 = inlined_call_operand.hbm [shape: f32[128,256], index: 1, kind: input, shape index: {}]   ;;  %s4079_s2 = inlined_call_operand.hbm [shape: bf16[256,1024], index: 2, kind: input, shape index: {}]   ;;  %s4080_s3 = inlined_call_operand.vmem [shape: f32[1,1024], index: 3, kind: input, shape index: {}]   ;;  %s4081_s4 = inlined_call_operand.hbm [shape: bf16[1024,256], index: 4, kind: input, shape index: {}]   ;;  %s4082_s5 = inlined_call_operand.vmem [shape: f32[1,256], index: 5, kind: input, shape index: {}]   ;;  %s4083_s6 = inlined_call_operand.hbm [shape: f32[3,8,256], index: 6, kind: input, shape index: {}]   ;;  %s4084_s7 = inlined_call_operand.hbm [shape: f32[3,8,256], index: 7, kind: output, shape index: {}]  }
   0x1   :  { %4088 = sst [smem:[#allocation19_spill]] %s4077_s0 }
   0x2   :  { %4089 = sst [smem:[#allocation20_spill]] %s4078_s1 }
   0x3   :  { %4090 = sst [smem:[#allocation21_spill]] %s4079_s2 }
   0x4   :  { %12 = vsyncpa [#allocation5], 0 }
   0x5   :  { %13 = vsyncpa [#allocation8], 0 }
   0x6   :  { %14 = vsyncpa [#allocation11], 0 }
   0x7   :  { %15 = vsyncpa [#allocation6], 0 }
   0x8   :  { %17 = vsyncpa [#allocation6 + $0x1], 0  ;;  %s3663_s24 = smov 0   ;;  %s3665_s25 = smov 0  }
   0x9   :  { %s3667_s26 = smov 0   ;;  %s3669_s27 = smov 0  }
   0xa   :  { %s3671_s28 = smov 0   ;;  %s3673_s29 = smov 0  }
   0xb LB: > { %s3694_s30 = sadd.s32 4294967295, %s3607_s29   ;;  %p2709_p0 = scmp.ge.s32.totalorder %s3607_s29, 1  ;;  %s3607_s29 = sphi %s3673_s29, %s23_s29   ;;  %s3603_s28 = sphi %s3671_s28, %s4117_s28   ;;  %s3599_s27 = sphi %s3669_s27, %s4116_s27   ;;  %s3595_s26 = sphi %s3667_s26, %s4115_s26   ;;  %s3591_s25 = sphi %s3665_s25, %s4114_s25   ;;  %s3587_s24 = sphi %s3663_s24, %s4113_s24  }
   0xc   : > { %p4085_p1 = scmp.eq.s32.totalorder %s3694_s30, 0  ;;  %p227_p3 = scmp.lt.s32.totalorder %s3607_s29, 4 }
   0xd   : > { %s3609_s9 = smov [#allocation4]   ;;  %s3610_s11 = smov [#allocation7]  }
   0xe   : > { %p3700_p4 = pnand %p2709_p0, %p227_p3  ;;  %s242_s10 = sshll.u32 %s3609_s9, 4  ;;  %s243_s10 = int_to_ptr.vmem [resolvable:$true] %s242_s10 }
   0xf   : > { %s252_s12 = sshll.u32 %s3610_s11, 4  ;;  %s3611_s14 = smov [#allocation9]   ;;  %s3706_s12 = int_to_ptr.vmem [resolvable:$true] %s252_s12 }
  0x10   : > { %s4091_s8 = scalar_select %p3700_p4, 1, 0 }
  0x11   : > { %p3085_p5 = pneg %p3700_p4  ;;  %s3714_s15 = sshll.u32 %s3611_s14, 4  ;;  %s266_s15 = int_to_ptr.vmem [resolvable:$true] %s3714_s15 }
  0x12   : > { %s4093_s0 = sld [smem:[#allocation19_spill]] }
  0x13   : > { %p3710_p6 = pnand %p3085_p5, %p4085_p1 }
  0x15   : > { %p3724_p8 = pneg %p3710_p6 }
  0x18   : > { %s3371_s18 = scalar_lea.hbm %s4093_s0, 128 }
  0x19   : > { %p3372_p7 = scmp.ne.s32.totalorder %s4093_s0, %s3371_s18  ;;  %p3378_p11 = scmp.lt.u32.totalorder %s3371_s18, %s4093_s0 }
  0x1b   : > { %p3374_p9 = pnand %p3724_p8, %p3372_p7 }
  0x1d   : > { %p3375_p10 = pneg %p3374_p9 }
  0x1f   : > { %p3380_p12 = pnand %p3378_p11, %p3375_p10 }
  0x21   : > { %3383 = shalt.err (!%p3380_p12)
}
  0x22   : > { %s3384_s9 = scalar_lea.vmem %s243_s10, 128  ;;  %p3392_p5 = scmp.lt.s32.totalorder %s243_s10, %s243_s10 }
  0x23   : > { %p3385_p13 = scmp.ne.s32.totalorder %s243_s10, %s3384_s9  ;;  %p3393_p2 = scmp.lt.s32.totalorder %s3384_s9, %s3384_s9 }
  0x25   : > { %p3387_p0 = pnand %p3385_p13, %p3724_p8  ;;  %p3394_p1 = por %p3393_p2, %p3392_p5 }
  0x27   : > { %p3388_p3 = pneg %p3387_p0 }
  0x29   : > { %p3395_p4 = pnand %p3394_p1, %p3388_p3 }
  0x2b   : > { %3398 = shalt.err (!%p3395_p4)
}
  0x2c   : > { %3088 = dma.hbm_to_vmem [thread:$0]  (!%p3710_p6), %s4093_s0, 128, %s243_s10, [#allocation5]  }
  0x2d   : > { %s4095_s1 = sld [smem:[#allocation20_spill]] }
  0x33   : > { %s3399_s18 = scalar_lea.hbm %s4095_s1, 4096 }
  0x34   : > { %p3400_p7 = scmp.ne.s32.totalorder %s4095_s1, %s3399_s18  ;;  %p3406_p1 = scmp.lt.u32.totalorder %s3399_s18, %s4095_s1 }
  0x36   : > { %p3402_p9 = pnand %p3400_p7, %p3724_p8 }
  0x38   : > { %p3403_p2 = pneg %p3402_p9 }
  0x3a   : > { %p3408_p4 = pnand %p3406_p1, %p3403_p2 }
  0x3c   : > { %3411 = shalt.err (!%p3408_p4)
}
  0x3d   : > { %s3412_s10 = scalar_lea.vmem %s3706_s12, 4096  ;;  %p3420_p13 = scmp.lt.s32.totalorder %s3706_s12, %s3706_s12 }
  0x3e   : > { %p3413_p10 = scmp.ne.s32.totalorder %s3706_s12, %s3412_s10  ;;  %p3421_p0 = scmp.lt.s32.totalorder %s3412_s10, %s3412_s10 }
  0x40   : > { %p3415_p11 = pnand %p3413_p10, %p3724_p8  ;;  %p3422_p3 = por %p3421_p0, %p3420_p13 }
  0x42   : > { %p3416_p12 = pneg %p3415_p11 }
  0x44   : > { %p3423_p5 = pnand %p3422_p3, %p3416_p12 }
  0x46   : > { %3426 = shalt.err (!%p3423_p5)
}
  0x47   : > { %s3612_s9 = smov 256   ;;  %s3613_s11 = smov 16  }
  0x48   : > { %3091 = dma.hbm_to_vmem [thread:$0]  (!%p3710_p6), %s4095_s1, 4096, %s3706_s12, [#allocation8], %s3612_s9, %s3612_s9, %s3613_s11  }
  0x49   : > { %s4096_s2 = sld [smem:[#allocation21_spill]] }
  0x4f   : > { %s3427_s19 = scalar_lea.hbm %s4096_s2, 16384 }
  0x50   : > { %p3428_p7 = scmp.ne.s32.totalorder %s4096_s2, %s3427_s19  ;;  %p3434_p1 = scmp.lt.u32.totalorder %s3427_s19, %s4096_s2 }
  0x52   : > { %p3430_p9 = pnand %p3428_p7, %p3724_p8 }
  0x54   : > { %p3431_p2 = pneg %p3430_p9 }
  0x56   : > { %p3436_p4 = pnand %p3434_p1, %p3431_p2 }
  0x58   : > { %3439 = shalt.err (!%p3436_p4)
}
  0x59   : > { %s3440_s14 = scalar_lea.vmem %s266_s15, 16384  ;;  %p3448_p13 = scmp.lt.s32.totalorder %s266_s15, %s266_s15 }
  0x5a   : > { %p3441_p10 = scmp.ne.s32.totalorder %s266_s15, %s3440_s14  ;;  %p3449_p0 = scmp.lt.s32.totalorder %s3440_s14, %s3440_s14 }
  0x5c   : > { %p3443_p11 = pnand %p3441_p10, %p3724_p8  ;;  %p3450_p3 = por %p3449_p0, %p3448_p13 }
  0x5e   : > { %p3444_p12 = pneg %p3443_p11 }
  0x60   : > { %p3451_p5 = pnand %p3450_p3, %p3444_p12 }
  0x62   : > { %3454 = shalt.err (!%p3451_p5)
}
  0x63   : > { %s3614_s12 = smov 512   ;;  %s3615_s9 = smov 32  }
  0x64   : > { %3094 = dma.hbm_to_vmem [thread:$0]  (!%p3710_p6), %s4096_s2, 16384, %s266_s15, [#allocation8], %s3614_s12, %s3614_s12, %s3615_s9  }
  0x65   : > { %s3616_s17 = smov [#allocation10]   ;;  %s3455_s22 = scalar_lea.hbm %s4081_s4, 16384 }
  0x66   : > { %s281_s18 = sshll.u32 %s3616_s17, 4  ;;  %p3456_p7 = scmp.ne.s32.totalorder %s4081_s4, %s3455_s22  ;;  %s282_s18 = int_to_ptr.vmem [resolvable:$true] %s281_s18 }
  0x67   : > { %p3462_p1 = scmp.lt.u32.totalorder %s3455_s22, %s4081_s4 }
  0x68   : > { %p3458_p9 = pnand %p3456_p7, %p3724_p8 }
  0x6a   : > { %p3459_p2 = pneg %p3458_p9 }
  0x6c   : > { %p3464_p4 = pnand %p3462_p1, %p3459_p2 }
  0x6e   : > { %3467 = shalt.err (!%p3464_p4)
}
  0x6f   : > { %s3468_s15 = scalar_lea.vmem %s282_s18, 16384  ;;  %p3476_p13 = scmp.lt.s32.totalorder %s282_s18, %s282_s18 }
  0x70   : > { %p3469_p10 = scmp.ne.s32.totalorder %s282_s18, %s3468_s15  ;;  %p3477_p0 = scmp.lt.s32.totalorder %s3468_s15, %s3468_s15 }
  0x72   : > { %p3471_p11 = pnand %p3469_p10, %p3724_p8  ;;  %p3478_p3 = por %p3477_p0, %p3476_p13 }
  0x74   : > { %p3472_p12 = pneg %p3471_p11 }
  0x76   : > { %p3479_p5 = pnand %p3478_p3, %p3472_p12 }
  0x78   : > { %3482 = shalt.err (!%p3479_p5)
}
  0x79   : > { %s3617_s12 = smov 128   ;;  %s3618_s0 = smov 8  }
  0x7a   : > { %3097 = dma.hbm_to_vmem [thread:$0]  (!%p3710_p6), %s4081_s4, 16384, %s282_s18, [#allocation11], %s3617_s12, %s3617_s12, %s3618_s0  }
  0x7b   : > { %s2708_s11 = sadd.s32 4294967294, %s3607_s29   ;;  %s32_s16 = sadd.s32 1, %s3603_s28 }
  0x7c   : > { %s175_s17 = sadd.s32 1, %s3595_s26  ;;  %p33_p8 = scmp.ge.s32.totalorder %s32_s16, 3 }
  0x7d   : > { %p182_p7 = scmp.ne.s32.totalorder %s3595_s26, %s3591_s25  ;;  %p183_p9 = scmp.eq.s32.totalorder %s3607_s29, 0 }
  0x7e   : > { %p188_p2 = scmp.ne.s32.totalorder %s3591_s25, %s3587_s24  ;;  %s4119_s16 = smov (%p33_p8, %s32_s16), 0 }
  0x7f   : > { %p3810_p1 = por %p183_p9, %p182_p7  ;;  %p4098_p4 = scmp.eq.s32.totalorder %s3694_s30, 0 }
  0x80   : > { %s170_s19 = ssub.s32 %s3603_s28, %s4119_s16  ;;  %p4100_p10 = scmp.eq.s32.totalorder %s3694_s30, 2 }
  0x81   : > { %p3816_p6 = por %p4098_p4, %p188_p2  ;;  %p173_p12 = scmp.eq.s32.totalorder %s170_s19, 0 }
  0x82   : > { %p3824_p11 = por %p4100_p10, %p182_p7  ;;  %p220_p13 = scmp.eq.s32.totalorder %s2708_s11, 2 }
  0x83   : > { %p3110_p0 = scmp.lt.s32.totalorder %s3607_s29, 3  ;;  %s298_s22 = sand.u32 1, %s3607_s29  }
  0x84   : > { %s4101_s20 = scalar_select %p3824_p11, 1, 0 }
  0x85   : > { %s3831_s23 = scalar_select %p173_p12, %s3595_s26, %s175_s17  }
  0x86   : > { %p3833_p3 = por %p220_p13, %p188_p2  ;;  %s300_s14 = sand.u32 1, %s3595_s26  }
  0x87   : > { %s2987_s15 = sshll.u32 %s3603_s28, 8  ;;  %s2715_s12 = sshll.u32 %s300_s14, 4 }
  0x88   : > { %s4102_s10 = scalar_select %p3833_p3, 1, 0 }
  0x89   : > { %s3842_s9 = scalar_lea.hbm %s4083_s6, %s2987_s15  ;;  %p3846_p5 = pnand %p3110_p0, %p3810_p1 }
  0x8a   : > { %s302_s17 = scalar_lea.vmem [#allocation12], %s2715_s12  ;;  %s299_s14 = scalar_lea.sflag [#allocation5], %s298_s22 }
  0x8b   : > { %s312_s19 = sshll.u32 %s302_s17, 4  ;;  %s3483_s1 = scalar_lea.hbm %s3842_s9, 256  ;;  %s3850_s19 = int_to_ptr.vmem [resolvable:$true] %s312_s19 }
  0x8c   : > { %p3484_p8 = scmp.ne.s32.totalorder %s3842_s9, %s3483_s1  ;;  %p3485_p7 = pneg %p3846_p5 }
  0x8d   : > { %s3488_s0 = scalar_lea.hbm %s4083_s6, 768  ;;  %p3489_p1 = scmp.lt.u32.totalorder %s3842_s9, %s4083_s6 }
  0x8e   : > { %p3486_p9 = pnand %p3485_p7, %p3484_p8  ;;  %p3490_p4 = scmp.lt.u32.totalorder %s3488_s0, %s3483_s1 }
  0x8f   : > { %p3492_p12 = scmp.lt.u32.totalorder %s3483_s1, %s3842_s9 }
  0x90   : > { %p3487_p2 = pneg %p3486_p9  ;;  %p3491_p10 = por %p3490_p4, %p3489_p1 }
  0x92   : > { %p3493_p13 = por %p3492_p12, %p3491_p10 }
  0x94   : > { %p3494_p0 = pnand %p3493_p13, %p3487_p2 }
  0x96   : > { %3497 = shalt.err (!%p3494_p0)
}
  0x97   : > { %s3498_s22 = scalar_lea.vmem %s3850_s19, 256  ;;  %s3619_s12 = smov [#allocation12]  }
  0x98   : > { %p3499_p8 = scmp.ne.s32.totalorder %s3850_s19, %s3498_s22  ;;  %s3503_s17 = sshll.u32 %s3619_s12, 4  ;;  %s3504_s17 = int_to_ptr.vmem [resolvable:$false] %s3503_s17 }
  0x99   : > { %s3505_s2 = scalar_lea.vmem %s3504_s17, 512  ;;  %p3506_p11 = scmp.lt.s32.totalorder %s3850_s19, %s3504_s17 }
  0x9a   : > { %p3501_p9 = pnand %p3499_p8, %p3485_p7  ;;  %p3507_p1 = scmp.lt.s32.totalorder %s3505_s2, %s3498_s22 }
  0x9c   : > { %p3502_p3 = pneg %p3501_p9  ;;  %p3508_p4 = por %p3507_p1, %p3506_p11 }
  0x9e   : > { %p3509_p10 = pnand %p3508_p4, %p3502_p3 }
  0xa0   : > { %3512 = shalt.err (!%p3509_p10)
}
  0xa1   : > { %3101 = dma.hbm_to_vmem [thread:$0]  (!%p3846_p5), %s3842_s9, 256, %s3850_s19, %s299_s14  }
  0xa2   : > { %p4104_p2 = scmp.ne.s32.totalorder %s4091_s8, 0 }
  0xa3   : > { %p4105_p7 = scmp.eq.s32.totalorder (!%p4104_p2), %s3694_s30, 0 }
  0xa4   : > { %321 = sbr.rel (%p4104_p2) target bundleno = 1293 (0x50d), region = 48 }
  0xab   : > { %3566 = dma.done.wait (%p4105_p7), [#allocation5], 128   ;;  %p4106_p12 = pmov %p4105_p7 }
  0xac   : > { %p4107_p13 = pmov %p4105_p7 }
  0xad   : > { %3568 = vsyncadd (%p4106_p12), [#allocation5], 4294967168 }
  0xae   : > { %3570 = dma.done.wait (%p4107_p13), [#allocation8], 20480   ;;  %p4108_p11 = pmov %p4105_p7 }
  0xaf   : > { %p4109_p3 = pmov %p4105_p7 }
  0xb0   : > { %3572 = vsyncadd (%p4108_p11), [#allocation8], 4294946816 }
  0xb1   : > { %3574 = dma.done.wait (%p4109_p3), [#allocation11], 16384   ;;  %p4110_p5 = pmov %p4109_p3 }
  0xb2   : > { %s339_s1 = sand.u32 1, %s3694_s30   ;;  %s341_s8 = sand.u32 1, %s3591_s25  }
  0xb3   : > { %3576 = vsyncadd (%p4110_p5), [#allocation11], 4294950912  ;;  %s2723_s9 = sshll.u32 %s341_s8, 4  ;;  %s340_s11 = scalar_lea.sflag [#allocation5], %s339_s1 }
  0xb4   : > { %s3895_s19 = scalar_lea.vmem [#allocation12], %s2723_s9 }
  0xb5   : > { %3578 = dma.done.wait (%p3816_p6), %s340_s11, 256  }
  0xb6   : > { %3580 = vsyncadd (%p3816_p6), %s340_s11, 4294967040  ;;  %s3901_s14 = scalar_lea.vmem [#allocation13], %s2723_s9  ;;  %p2725_p0 = scmp.ne.s32.totalorder %s3599_s27, 0 }
  0xb7   : > { %v380_v0 = vld [vmem:[#allocation4] sm:$0xff] (!%p2725_p0)  ;;  %v3620_v1 = vmov (!%p2725_p0), 0.0  }
  0xb8   : > { %377 = sbr.rel (%p2725_p0) target bundleno = 191 (0xbf), region = 72  ;;  %378 = vst [vmem:[#allocation2] sm:$0xff] (!%p2725_p0), %v3620_v1  ;;  %379 = vst [vmem:[#allocation2 + $0x8] sm:$0xff] (!%p2725_p0), %v3620_v1 }
  0xb9   : > { %381 = vst [vmem:[#allocation3] sm:$0xff] (!%p2725_p0), %v380_v0 }
  0xbf PF: > { %v384_v2 = vld [vmem:[#allocation7 + $0x8] sm:$0xff]  ;;  %v386_v3 = vld [vmem:[#allocation7 + $0x18] sm:$0xff]  ;;  %v383_v4 = vld [vmem:[#allocation7] sm:$0xff]  ;;  %v3621_v9 = vmov 0.0   ;;  %s2988_s0 = sshll.u32 %s3599_s27, 8  ;;  %s2583_s21 = sshll.u32 %s3901_s14, 4  ;;  %s2584_s21 = int_to_ptr.vmem [resolvable:$true] %s2583_s21 }
  0xc0   : > { %v3904_v5 = vpack.c.bf16 %v386_v3, %v384_v2  ;;  %v385_v6 = vld [vmem:[#allocation7 + $0x10] sm:$0xff]  ;;  %v388_v7 = vld [vmem:[#allocation7 + $0x28] sm:$0xff]  ;;  %v390_v8 = vld [vmem:[#allocation7 + $0x38] sm:$0xff]  ;;  %484 = vmatprep.mubr.f32.mxu0 %v3621_v9  ;;  %s4034_s17 = scalar_lea.hbm %s4084_s7, %s2988_s0  ;;  %s2567_s2 = scalar_lea.sflag [#allocation6], %s341_s8 }
  0xc1   : > { %v3906_v10 = vpack.c.bf16 %v385_v6, %v383_v4  ;;  %v3908_v11 = vpack.c.bf16 %v390_v8, %v388_v7  ;;  %v387_v12 = vld [vmem:[#allocation7 + $0x20] sm:$0xff]  ;;  %v389_v13 = vld [vmem:[#allocation7 + $0x30] sm:$0xff]  ;;  %v392_v14 = vld [vmem:[#allocation7 + $0x48] sm:$0xff]  ;;  %s3513_s1 = scalar_lea.vmem %s2584_s21, 256  ;;  %p4111_p8 = scmp.ne.s32.totalorder %s4101_s20, 0 }
  0xc2   : > { %2990 = vmatprep.subr.bf16.mxu0 %v3904_v5  ;;  %v394_v15 = vld [vmem:[#allocation7 + $0x58] sm:$0xff]  ;;  %v3912_v16 = vpack.c.bf16 %v389_v13, %v387_v12  ;;  %v391_v18 = vld [vmem:[#allocation7 + $0x40] sm:$0xff]  ;;  %v393_v19 = vld [vmem:[#allocation7 + $0x50] sm:$0xff]  ;;  %p3514_p6 = scmp.ne.s32.totalorder %s2584_s21, %s3513_s1  ;;  %s3622_s9 = smov [#allocation13]  }
  0xc3   : > { %2992 = vmatpush1.bf16.msra.mxu0 %v3906_v10  ;;  %v3915_v17 = vpack.c.bf16 %v394_v15, %v392_v14  ;;  %v396_v20 = vld [vmem:[#allocation7 + $0x68] sm:$0xff]  ;;  %v398_v21 = vld [vmem:[#allocation7 + $0x78] sm:$0xff]  ;;  %v3918_v22 = vpack.c.bf16 %v393_v19, %v391_v18  ;;  %v395_v24 = vld [vmem:[#allocation7 + $0x60] sm:$0xff]  ;;  %s3517_s11 = sshll.u32 %s3622_s9, 4  ;;  %s3518_s11 = int_to_ptr.vmem [resolvable:$false] %s3517_s11 }
  0xc4   : > { %2994 = vmatprep.subr.bf16.mxu0 %v3908_v11  ;;  %v3921_v23 = vpack.c.bf16 %v398_v21, %v396_v20  ;;  %v397_v25 = vld [vmem:[#allocation7 + $0x70] sm:$0xff]  ;;  %v400_v26 = vld [vmem:[#allocation7 + $0x88] sm:$0xff]  ;;  %v402_v27 = vld [vmem:[#allocation7 + $0x98] sm:$0xff]  ;;  %p3515_p9 = pnand %p3514_p6, %p4111_p8  ;;  %p3520_p4 = scmp.lt.s32.totalorder %s2584_s21, %s3518_s11 }
  0xc5   : > { %v499_v28 = vld [vmem:[#allocation9 + $0x10] sm:$0xff]  ;;  %v3924_v29 = vpack.c.bf16 %v397_v25, %v395_v24  ;;  %v399_v30 = vld [vmem:[#allocation7 + $0x80] sm:$0xff]  ;;  %v3927_v33 = vpack.c.bf16 %v402_v27, %v400_v26  ;;  %v404_v34 = vld [vmem:[#allocation7 + $0xa8] sm:$0xff] }
  0xc6   : > { %v401_v31 = vld [vmem:[#allocation7 + $0x90] sm:$0xff]  ;;  %v406_v39 = vld [vmem:[#allocation7 + $0xb8] sm:$0xff]  ;;  %v403_v46 = vld [vmem:[#allocation7 + $0xa0] sm:$0xff]  ;;  %p3516_p1 = pneg %p3515_p9 }
  0xc7   : > { %2996 = vmatpush1.bf16.msra.mxu0 %v3912_v16  ;;  %v503_v32 = vld [vmem:[#allocation9 + $0x30] sm:$0xff]  ;;  %v3930_v43 = vpack.c.bf16 %v401_v31, %v399_v30  ;;  %v3933_v45 = vpack.c.bf16 %v406_v39, %v404_v34  ;;  %v408_v48 = vld [vmem:[#allocation7 + $0xc8] sm:$0xff]  ;;  %v410_v50 = vld [vmem:[#allocation7 + $0xd8] sm:$0xff] }
  0xc8   : > { %2998 = vmatprep.subr.bf16.mxu0 %v3915_v17  ;;  %v2731_v35 = vcombine.high %v499_v28, %v503_v32  ;;  %v2730_v36 = vcombine.low %v499_v28, %v503_v32  ;;  %v507_v37 = vld [vmem:[#allocation9 + $0x50] sm:$0xff]  ;;  %v3939_v55 = vpack.c.bf16 %v410_v50, %v408_v48  ;;  %v407_v56 = vld [vmem:[#allocation7 + $0xc0] sm:$0xff]  ;;  %v412_v58 = vld [vmem:[#allocation7 + $0xe8] sm:$0xff] }
  0xc9   : > { %v511_v38 = vld [vmem:[#allocation9 + $0x70] sm:$0xff]  ;;  %v414_v60 = vld [vmem:[#allocation7 + $0xf8] sm:$0xff]  ;;  %v411_v2 = vld [vmem:[#allocation7 + $0xe0] sm:$0xff] }
  0xca   : > { %v2739_v40 = vcombine.high %v507_v37, %v511_v38  ;;  %v515_v41 = vld [vmem:[#allocation9 + $0x90] sm:$0xff]  ;;  %1351 = vmatprep.subr.bf16.mxu1 %v2731_v35  ;;  %v2738_v44 = vcombine.low %v507_v37, %v511_v38  ;;  %v3945_v1 = vpack.c.bf16 %v414_v60, %v412_v58  ;;  %v497_v4 = vld [vmem:[#allocation9] sm:$0xff] }
  0xcb   : > { %3000 = vmatpush1.bf16.msra.mxu0 %v3918_v22  ;;  %v519_v42 = vld [vmem:[#allocation9 + $0xb0] sm:$0xff]  ;;  %1352 = vmatpush1.bf16.msra.mxu1 %v2730_v36  ;;  %v501_v7 = vld [vmem:[#allocation9 + $0x20] sm:$0xff] }
  0xcc   : > { %3002 = vmatprep.subr.bf16.mxu0 %v3921_v23  ;;  %v405_v47 = vld [vmem:[#allocation7 + $0xb0] sm:$0xff]  ;;  %1353 = vmatprep.subr.bf16.mxu1 %v2739_v40  ;;  %v2747_v49 = vcombine.high %v515_v41, %v519_v42  ;;  %v2746_v54 = vcombine.low %v515_v41, %v519_v42  ;;  %v2727_v14 = vcombine.high %v497_v4, %v501_v7  ;;  %v505_v15 = vld [vmem:[#allocation9 + $0x40] sm:$0xff] }
  0xcd   : > { %v523_v51 = vld [vmem:[#allocation9 + $0xd0] sm:$0xff]  ;;  %v3936_v53 = vpack.c.bf16 %v405_v47, %v403_v46  ;;  %v509_v19 = vld [vmem:[#allocation9 + $0x60] sm:$0xff]  ;;  %v2726_v25 = vcombine.low %v497_v4, %v501_v7 }
  0xce   : > { %v527_v52 = vld [vmem:[#allocation9 + $0xf0] sm:$0xff]  ;;  %v513_v26 = vld [vmem:[#allocation9 + $0x80] sm:$0xff]  ;;  %v2735_v32 = vcombine.high %v505_v15, %v509_v19  ;;  %v2734_v35 = vcombine.low %v505_v15, %v509_v19 }
  0xcf   : > { %3004 = vmatpush1.bf16.msra.mxu0 %v3924_v29  ;;  %1354 = vmatpush1.bf16.msra.mxu1 %v2738_v44  ;;  %v409_v57 = vld [vmem:[#allocation7 + $0xd0] sm:$0xff]  ;;  %v2755_v59 = vcombine.high %v523_v51, %v527_v52  ;;  %v2754_v0 = vcombine.low %v523_v51, %v527_v52  ;;  %v517_v27 = vld [vmem:[#allocation9 + $0xa0] sm:$0xff] }
  0xd0   : > { %3006 = vmatprep.subr.bf16.mxu0 %v3927_v33  ;;  %1355 = vmatprep.subr.bf16.mxu1 %v2747_v49  ;;  %v531_v61 = vld [vmem:[#allocation9 + $0x110] sm:$0xff]  ;;  %v3942_v63 = vpack.c.bf16 %v409_v57, %v407_v56  ;;  %v521_v36 = vld [vmem:[#allocation9 + $0xc0] sm:$0xff]  ;;  %v2743_v41 = vcombine.high %v513_v26, %v517_v27  ;;  %v2742_v44 = vcombine.low %v513_v26, %v517_v27 }
  0xd1   : > { %v535_v62 = vld [vmem:[#allocation9 + $0x130] sm:$0xff]  ;;  %v525_v37 = vld [vmem:[#allocation9 + $0xe0] sm:$0xff] }
  0xd2   : > { %v413_v3 = vld [vmem:[#allocation7 + $0xf0] sm:$0xff]  ;;  %v2763_v6 = vcombine.high %v531_v61, %v535_v62  ;;  %v2762_v13 = vcombine.low %v531_v61, %v535_v62  ;;  %v529_v46 = vld [vmem:[#allocation9 + $0x100] sm:$0xff]  ;;  %v2751_v51 = vcombine.high %v521_v36, %v525_v37 }
  0xd3   : > { %3008 = vmatpush1.bf16.msra.mxu0 %v3930_v43  ;;  %1356 = vmatpush1.bf16.msra.mxu1 %v2746_v54  ;;  %v539_v8 = vld [vmem:[#allocation9 + $0x150] sm:$0xff]  ;;  %v3948_v12 = vpack.c.bf16 %v413_v3, %v411_v2  ;;  %v533_v47 = vld [vmem:[#allocation9 + $0x120] sm:$0xff]  ;;  %v2750_v54 = vcombine.low %v521_v36, %v525_v37 }
  0xd4   : > { %3010 = vmatprep.subr.bf16.mxu0 %v3933_v45  ;;  %1357 = vmatprep.subr.bf16.mxu1 %v2755_v59  ;;  %v543_v9 = vld [vmem:[#allocation9 + $0x170] sm:$0xff]  ;;  %v537_v56 = vld [vmem:[#allocation9 + $0x140] sm:$0xff]  ;;  %v2759_v61 = vcombine.high %v529_v46, %v533_v47 }
  0xd5   : > { %v2771_v18 = vcombine.high %v539_v8, %v543_v9  ;;  %v547_v20 = vld [vmem:[#allocation9 + $0x190] sm:$0xff]  ;;  %v2770_v28 = vcombine.low %v539_v8, %v543_v9  ;;  %v541_v57 = vld [vmem:[#allocation9 + $0x160] sm:$0xff] }
  0xd6   : > { %v551_v21 = vld [vmem:[#allocation9 + $0x1b0] sm:$0xff]  ;;  %v545_v2 = vld [vmem:[#allocation9 + $0x180] sm:$0xff]  ;;  %v2767_v8 = vcombine.high %v537_v56, %v541_v57 }
  0xd7   : > { %3012 = vmatpush1.bf16.msra.mxu0 %v3936_v53  ;;  %1358 = vmatpush1.bf16.msra.mxu1 %v2754_v0  ;;  %v417_v24 = vld [vmem:[#allocation3] sm:$0xff]  ;;  %v2779_v34 = vcombine.high %v547_v20, %v551_v21  ;;  %v2778_v38 = vcombine.low %v547_v20, %v551_v21  ;;  %v2758_v0 = vcombine.low %v529_v46, %v533_v47  ;;  %v549_v3 = vld [vmem:[#allocation9 + $0x1a0] sm:$0xff] }
  0xd8   : > { %3014 = vmatprep.subr.bf16.mxu0 %v3939_v55  ;;  %1359 = vmatprep.subr.bf16.mxu1 %v2763_v6  ;;  %v555_v30 = vld [vmem:[#allocation9 + $0x1d0] sm:$0xff]  ;;  %v557_v15 = vld [vmem:[#allocation9 + $0x1e0] sm:$0xff]  ;;  %v2775_v21 = vcombine.high %v545_v2, %v549_v3 }
  0xd9   : > { %v559_v31 = vld [vmem:[#allocation9 + $0x1f0] sm:$0xff]  ;;  %v561_v26 = vld [vmem:[#allocation9 + $0x200] sm:$0xff] }
  0xda   : > { %v563_v39 = vld [vmem:[#allocation9 + $0x210] sm:$0xff]  ;;  %v2787_v42 = vcombine.high %v555_v30, %v559_v31  ;;  %v2786_v48 = vcombine.low %v555_v30, %v559_v31  ;;  %v565_v27 = vld [vmem:[#allocation9 + $0x220] sm:$0xff] }
  0xdb   : > { %3016 = vmatpush1.bf16.msra.mxu0 %v3942_v63  ;;  %1360 = vmatpush1.bf16.msra.mxu1 %v2762_v13  ;;  %v567_v40 = vld [vmem:[#allocation9 + $0x230] sm:$0xff]  ;;  %v2766_v13 = vcombine.low %v537_v56, %v541_v57  ;;  %v569_v36 = vld [vmem:[#allocation9 + $0x240] sm:$0xff] }
  0xdc   : > { %3018 = vmatprep.subr.bf16.mxu0 %v3945_v1  ;;  %1361 = vmatprep.subr.bf16.mxu1 %v2771_v18  ;;  %v571_v49 = vld [vmem:[#allocation9 + $0x250] sm:$0xff]  ;;  %v2795_v52 = vcombine.high %v563_v39, %v567_v40  ;;  %v2794_v58 = vcombine.low %v563_v39, %v567_v40  ;;  %v573_v37 = vld [vmem:[#allocation9 + $0x260] sm:$0xff] }
  0xdd   : > { %v575_v50 = vld [vmem:[#allocation9 + $0x270] sm:$0xff]  ;;  %v577_v46 = vld [vmem:[#allocation9 + $0x280] sm:$0xff] }
  0xde   : > { %v579_v59 = vld [vmem:[#allocation9 + $0x290] sm:$0xff]  ;;  %v2803_v62 = vcombine.high %v571_v49, %v575_v50  ;;  %v2802_v4 = vcombine.low %v571_v49, %v575_v50  ;;  %v581_v47 = vld [vmem:[#allocation9 + $0x2a0] sm:$0xff]  ;;  %v2799_v49 = vcombine.high %v569_v36, %v573_v37 }
  0xdf   : > { %3020 = vmatpush1.bf16.msra.mxu0 %v3948_v12  ;;  %1362 = vmatpush1.bf16.msra.mxu1 %v2770_v28  ;;  %v583_v60 = vld [vmem:[#allocation9 + $0x2b0] sm:$0xff]  ;;  %v2807_v56 = vcombine.high %v577_v46, %v581_v47  ;;  %v2806_v57 = vcombine.low %v577_v46, %v581_v47  ;;  %v510_v46 = vld [vmem:[#allocation9 + $0x68] sm:$0xff] }
  0xe0   : > { %1265 = vmatprep.subr.bf16.mxu0 %v2727_v14  ;;  %1363 = vmatprep.subr.bf16.mxu1 %v2779_v34  ;;  %v587_v6 = vld [vmem:[#allocation9 + $0x2d0] sm:$0xff]  ;;  %v2811_v9 = vcombine.high %v579_v59, %v583_v60  ;;  %v553_v14 = vld [vmem:[#allocation9 + $0x1c0] sm:$0xff]  ;;  %v2810_v18 = vcombine.low %v579_v59, %v583_v60 }
  0xe1   : > { %v591_v7 = vld [vmem:[#allocation9 + $0x2f0] sm:$0xff]  ;;  %v593_v59 = vld [vmem:[#allocation9 + $0x300] sm:$0xff] }
  0xe2   : > { %485 = vmatmul.mubr.f32.vlgmr.msra.gmra.mrb[0].mxu0 %v417_v24  ;;  %v595_v19 = vld [vmem:[#allocation9 + $0x310] sm:$0xff]  ;;  %v2819_v24 = vcombine.high %v587_v6, %v591_v7  ;;  %v2818_v28 = vcombine.low %v587_v6, %v591_v7  ;;  %v597_v60 = vld [vmem:[#allocation9 + $0x320] sm:$0xff] }
  0xe3   : > { %1266 = vmatpush1.bf16.msra.mxu0 %v2726_v25  ;;  %1364 = vmatpush1.bf16.msra.mxu1 %v2778_v38  ;;  %v599_v20 = vld [vmem:[#allocation9 + $0x330] sm:$0xff]  ;;  %v2774_v25 = vcombine.low %v545_v2, %v549_v3  ;;  %v605_v2 = vld [vmem:[#allocation9 + $0x360] sm:$0xff]  ;;  %v2822_v3 = vcombine.low %v593_v59, %v597_v60 }
  0xe4   : > { %1267 = vmatprep.subr.bf16.mxu0 %v2735_v32  ;;  %1365 = vmatprep.subr.bf16.mxu1 %v2787_v42  ;;  %v603_v30 = vld [vmem:[#allocation9 + $0x350] sm:$0xff]  ;;  %v2783_v32 = vcombine.high %v553_v14, %v557_v15  ;;  %v2827_v34 = vcombine.high %v595_v19, %v599_v20  ;;  %v2826_v38 = vcombine.low %v595_v19, %v599_v20  ;;  %v609_v6 = vld [vmem:[#allocation9 + $0x380] sm:$0xff] }
  0xe5   : > { %v607_v31 = vld [vmem:[#allocation9 + $0x370] sm:$0xff]  ;;  %v613_v7 = vld [vmem:[#allocation9 + $0x3a0] sm:$0xff] }
  0xe6   : > { %v611_v39 = vld [vmem:[#allocation9 + $0x390] sm:$0xff]  ;;  %v2835_v42 = vcombine.high %v603_v30, %v607_v31 }
  0xe7   : > { %1268 = vmatpush1.bf16.msra.mxu0 %v2734_v35  ;;  %1366 = vmatpush1.bf16.msra.mxu1 %v2786_v48  ;;  %v2782_v35 = vcombine.low %v553_v14, %v557_v15  ;;  %v615_v40 = vld [vmem:[#allocation9 + $0x3b0] sm:$0xff]  ;;  %v2834_v48 = vcombine.low %v603_v30, %v607_v31  ;;  %v617_v15 = vld [vmem:[#allocation9 + $0x3c0] sm:$0xff] }
  0xe8   : > { %1269 = vmatprep.subr.bf16.mxu0 %v2743_v41  ;;  %1367 = vmatprep.subr.bf16.mxu1 %v2795_v52  ;;  %v2791_v41 = vcombine.high %v561_v26, %v565_v27  ;;  %v2843_v50 = vcombine.high %v611_v39, %v615_v40  ;;  %v585_v52 = vld [vmem:[#allocation9 + $0x2c0] sm:$0xff]  ;;  %v2842_v14 = vcombine.low %v611_v39, %v615_v40  ;;  %v619_v20 = vld [vmem:[#allocation9 + $0x3d0] sm:$0xff] }
  0xeb   : > { %1270 = vmatpush1.bf16.msra.mxu0 %v2742_v44  ;;  %1368 = vmatpush1.bf16.msra.mxu1 %v2794_v58  ;;  %v2790_v44 = vcombine.low %v561_v26, %v565_v27  ;;  %v498_v27 = vld [vmem:[#allocation9 + $0x8] sm:$0xff] }
  0xec   : > { %1271 = vmatprep.subr.bf16.mxu0 %v2751_v51  ;;  %1369 = vmatprep.subr.bf16.mxu1 %v2803_v62  ;;  %v2798_v51 = vcombine.low %v569_v36, %v573_v37  ;;  %v2823_v62 = vcombine.high %v593_v59, %v597_v60  ;;  %v416_v36 = vld [vmem:[#allocation2 + $0x8] sm:$0xff] }
  0xed   : > { %v522_v59 = vld [vmem:[#allocation9 + $0xc8] sm:$0xff] }
  0xee   : > { %v526_v60 = vld [vmem:[#allocation9 + $0xe8] sm:$0xff] }
  0xef   : > { %1272 = vmatpush1.bf16.msra.mxu0 %v2750_v54  ;;  %1370 = vmatpush1.bf16.msra.mxu1 %v2802_v4  ;;  %v589_v54 = vld [vmem:[#allocation9 + $0x2e0] sm:$0xff] }
  0xf0   : > { %1273 = vmatprep.subr.bf16.mxu0 %v2759_v61  ;;  %1371 = vmatprep.subr.bf16.mxu1 %v2811_v9  ;;  %v2815_v58 = vcombine.high %v585_v52, %v589_v54  ;;  %v2814_v61 = vcombine.low %v585_v52, %v589_v54  ;;  %v2839_v9 = vcombine.high %v609_v6, %v613_v7  ;;  %v3176_v52 = vld [vmem:[#allocation10] ss:$8 sps:$4 sm:$0xff]   ;;  %v3178_v54 = vld [vmem:[#allocation10 + $0x4] ss:$8 sps:$4 sm:$0xff]  }
  0xf3   : > { %1274 = vmatpush1.bf16.msra.mxu0 %v2758_v0  ;;  %1372 = vmatpush1.bf16.msra.mxu1 %v2810_v18  ;;  %v601_v0 = vld [vmem:[#allocation9 + $0x340] sm:$0xff] }
  0xf4   : > { %1275 = vmatprep.subr.bf16.mxu0 %v2767_v8  ;;  %1373 = vmatprep.subr.bf16.mxu1 %v2819_v24  ;;  %v2831_v4 = vcombine.high %v601_v0, %v605_v2  ;;  %v2830_v8 = vcombine.low %v601_v0, %v605_v2  ;;  %v621_v18 = vld [vmem:[#allocation9 + $0x3e0] sm:$0xff]  ;;  %v2753_v2 = vcombine.high %v522_v59, %v526_v60 }
  0xf5   : > { %v2847_v19 = vcombine.high %v617_v15, %v621_v18  ;;  %v2846_v24 = vcombine.low %v617_v15, %v621_v18  ;;  %v3185_v15 = vld [vmem:[#allocation10 + $0x30] ss:$8 sps:$4 sm:$0xff]   ;;  %v3190_v18 = vld [vmem:[#allocation10 + $0x44] ss:$8 sps:$4 sm:$0xff]  }
  0xf7   : > { %1276 = vmatpush1.bf16.msra.mxu0 %v2766_v13  ;;  %1374 = vmatpush1.bf16.msra.mxu1 %v2818_v28  ;;  %v2838_v13 = vcombine.low %v609_v6, %v613_v7  ;;  %v502_v28 = vld [vmem:[#allocation9 + $0x28] sm:$0xff]  ;;  %v3187_v7 = vld [vmem:[#allocation10 + $0x34] ss:$8 sps:$4 sm:$0xff]  }
  0xf8   : > { %1277 = vmatprep.subr.bf16.mxu0 %v2775_v21  ;;  %1375 = vmatprep.subr.bf16.mxu1 %v2827_v34  ;;  %v623_v21 = vld [vmem:[#allocation9 + $0x3f0] sm:$0xff]  ;;  %v2729_v30 = vcombine.high %v498_v27, %v502_v28  ;;  %v2728_v31 = vcombine.low %v498_v27, %v502_v28  ;;  %v415_v34 = vld [vmem:[#allocation2] sm:$0xff] }
  0xf9   : > { %v2850_v26 = vcombine.low %v619_v20, %v623_v21  ;;  %v3182_v6 = vld [vmem:[#allocation10 + $0x20] ss:$8 sps:$4 sm:$0xff]  }
  0xfb   : > { %1278 = vmatpush1.bf16.msra.mxu0 %v2774_v25  ;;  %1376 = vmatpush1.bf16.msra.mxu1 %v2826_v38  ;;  %v2851_v25 = vcombine.high %v619_v20, %v623_v21  ;;  %v546_v21 = vld [vmem:[#allocation9 + $0x188] sm:$0xff] }
  0xfc   : > { %1279 = vmatprep.subr.bf16.mxu0 %v2783_v32  ;;  %1377 = vmatprep.subr.bf16.mxu1 %v2835_v42  ;;  %v419_v32 = vld [vmem:[%s3895_s19 + $0x8] sm:$0xff] }
  0xfd   : > { %v494_v38 = vmul.f32 0.01, %v419_v32  ;;  %v3191_v32 = vld [vmem:[#allocation10 + $0x50] ss:$8 sps:$4 sm:$0xff]  }
  0xff   : > { %1280 = vmatpush1.bf16.msra.mxu0 %v2782_v35  ;;  %1378 = vmatpush1.bf16.msra.mxu1 %v2834_v48  ;;  %v418_v35 = vld [vmem:[%s3895_s19] sm:$0xff] }
 0x100   : > { %1281 = vmatprep.subr.bf16.mxu0 %v2791_v41  ;;  %1379 = vmatprep.subr.bf16.mxu1 %v2843_v50  ;;  %v493_v40 = vmul.f32 0.01, %v418_v35  ;;  %v514_v50 = vld [vmem:[#allocation9 + $0x88] sm:$0xff] }
 0x103   : > { %1282 = vmatpush1.bf16.msra.mxu0 %v2790_v44  ;;  %1380 = vmatpush1.bf16.msra.mxu1 %v2842_v14  ;;  %v506_v44 = vld [vmem:[#allocation9 + $0x48] sm:$0xff] }
 0x104   : > { %1283 = vmatprep.subr.bf16.mxu0 %v2799_v49  ;;  %1381 = vmatprep.subr.bf16.mxu1 %v2851_v25  ;;  %v2737_v49 = vcombine.high %v506_v44, %v510_v46  ;;  %v542_v14 = vld [vmem:[#allocation9 + $0x168] sm:$0xff] }
 0x105   : > { %v3188_v25 = vld [vmem:[#allocation10 + $0x40] ss:$8 sps:$4 sm:$0xff]  }
 0x107   : > { %1284 = vmatpush1.bf16.msra.mxu0 %v2798_v51  ;;  %1382 = vmatpush1.bf16.msra.mxu1 %v2850_v26  ;;  %v518_v51 = vld [vmem:[#allocation9 + $0xa8] sm:$0xff]  ;;  %v3193_v26 = vld [vmem:[#allocation10 + $0x54] ss:$8 sps:$4 sm:$0xff]  }
 0x108   : > { %1285 = vmatprep.subr.bf16.mxu0 %v2807_v56  ;;  %v2736_v56 = vcombine.low %v506_v44, %v510_v46  ;;  %2295 = vmatprep.subr.bf16.mxu1 %v3178_v54  ;;  %v2744_v0 = vcombine.low %v514_v50, %v518_v51  ;;  %v570_v44 = vld [vmem:[#allocation9 + $0x248] sm:$0xff] }
 0x109   : > { %v574_v46 = vld [vmem:[#allocation9 + $0x268] sm:$0xff] }
 0x10a   : > { %v578_v54 = vld [vmem:[#allocation9 + $0x288] sm:$0xff] }
 0x10b   : > { %1286 = vmatpush1.bf16.msra.mxu0 %v2806_v57  ;;  %v3181_v57 = vld [vmem:[#allocation10 + $0x14] ss:$8 sps:$4 sm:$0xff]  }
 0x10c   : > { %1287 = vmatprep.subr.bf16.mxu0 %v2815_v58  ;;  %v2745_v58 = vcombine.high %v514_v50, %v518_v51  ;;  %v3202_v50 = vld [vmem:[#allocation10 + $0x84] ss:$8 sps:$4 sm:$0xff]  }
 0x10f   : > { %1288 = vmatpush1.bf16.msra.mxu0 %v2814_v61  ;;  %v3179_v61 = vld [vmem:[#allocation10 + $0x10] ss:$8 sps:$4 sm:$0xff]  }
 0x110   : > { %1289 = vmatprep.subr.bf16.mxu0 %v2823_v62  ;;  %v3184_v62 = vld [vmem:[#allocation10 + $0x24] ss:$8 sps:$4 sm:$0xff]  }
 0x113   : > { %1290 = vmatpush1.bf16.msra.mxu0 %v2822_v3  ;;  %v530_v3 = vld [vmem:[#allocation9 + $0x108] sm:$0xff] }
 0x114   : > { %1291 = vmatprep.subr.bf16.mxu0 %v2831_v4  ;;  %v534_v4 = vld [vmem:[#allocation9 + $0x128] sm:$0xff] }
 0x117   : > { %1292 = vmatpush1.bf16.msra.mxu0 %v2830_v8  ;;  %v2752_v8 = vcombine.low %v522_v59, %v526_v60  ;;  %v2800_v59 = vcombine.low %v570_v44, %v574_v46 }
 0x118   : > { %1293 = vmatprep.subr.bf16.mxu0 %v2839_v9  ;;  %v2761_v9 = vcombine.high %v530_v3, %v534_v4 }
 0x11b   : > { %1294 = vmatpush1.bf16.msra.mxu0 %v2838_v13  ;;  %v538_v13 = vld [vmem:[#allocation9 + $0x148] sm:$0xff] }
 0x11c   : > { %1295 = vmatprep.subr.bf16.mxu0 %v2847_v19  ;;  %v2760_v19 = vcombine.low %v530_v3, %v534_v4  ;;  %v2769_v20 = vcombine.high %v538_v13, %v542_v14  ;;  %v2768_v27 = vcombine.low %v538_v13, %v542_v14 }
 0x11f   : > { %1296 = vmatpush1.bf16.msra.mxu0 %v2846_v24  ;;  %v550_v24 = vld [vmem:[#allocation9 + $0x1a8] sm:$0xff] }
 0x120   : > { %1308 = vmatprep.subr.bf16.mxu0 %v2729_v30  ;;  %v2777_v28 = vcombine.high %v546_v21, %v550_v24  ;;  %v554_v30 = vld [vmem:[#allocation9 + $0x1c8] sm:$0xff]  ;;  %v2776_v35 = vcombine.low %v546_v21, %v550_v24 }
 0x1b5   : > { %v486_v37 = vpop.f32.mrb[0].mxu0 }
 0x1b6   : > { %v491_v39 = vadd.f32 %v486_v37, %v415_v34  ;;  %v488_v41 = vpop.f32.mrb[1].mxu0  ;;  %v3196_v34 = vld [vmem:[#allocation10 + $0x64] ss:$8 sps:$4 sm:$0xff]  }
 0x1b7   : > { %v492_v42 = vadd.f32 %v488_v41, %v416_v36  ;;  %v562_v37 = vld [vmem:[#allocation9 + $0x208] sm:$0xff] }
 0x1b8   : > { %v3956_v48 = vpack.c.bf16 %v493_v40, %v491_v39  ;;  %v3194_v39 = vld [vmem:[#allocation10 + $0x60] ss:$8 sps:$4 sm:$0xff]   ;;  %v3199_v40 = vld [vmem:[#allocation10 + $0x74] ss:$8 sps:$4 sm:$0xff]  }
 0x1b9   : > { %v3954_v47 = vpack.c.bf16 %v494_v38, %v492_v42  ;;  %v566_v38 = vld [vmem:[#allocation9 + $0x228] sm:$0xff] }
 0x1ba   : > { %v2793_v42 = vcombine.high %v562_v37, %v566_v38  ;;  %v2792_v51 = vcombine.low %v562_v37, %v566_v38  ;;  %v504_v37 = vld [vmem:[#allocation9 + $0x38] sm:$0xff] }
 0x1bb   : > { %1297 = vmatprep.mubr.bf16.mxu0 %v3954_v47  ;;  %1383 = vmatprep.mubr.bf16.mxu1 %v3954_v47 }
 0x1bc   : > { %1298 = vmatmul.mubr.bf16.vlgmr.msra.gmra.mrb[4].mxu0 %v3956_v48  ;;  %1384 = vmatmul.mubr.bf16.vlgmr.msra.gmra.mrb[0].mxu1 %v3956_v48 }
 0x1bd   : > { %1309 = vmatpush1.bf16.msra.mxu0 %v2728_v31  ;;  %1340 = vmatprep.mubr.bf16.mxu0 %v3954_v47  ;;  %v558_v31 = vld [vmem:[#allocation9 + $0x1e8] sm:$0xff] }
 0x1be   : > { %1310 = vmatprep.subr.bf16.mxu0 %v2737_v49  ;;  %2296 = vmatpush1.bf16.msra.mxu1 %v3176_v52  ;;  %v2785_v36 = vcombine.high %v554_v30, %v558_v31  ;;  %v2784_v41 = vcombine.low %v554_v30, %v558_v31  ;;  %v3197_v49 = vld [vmem:[#allocation10 + $0x70] ss:$8 sps:$4 sm:$0xff]   ;;  %v2801_v52 = vcombine.high %v570_v44, %v574_v46  ;;  %v618_v31 = vld [vmem:[#allocation9 + $0x3c8] sm:$0xff] }
 0x1bf   : > { %2297 = vmatprep.subr.bf16.mxu1 %v3181_v57  ;;  %v3200_v57 = vld [vmem:[#allocation10 + $0x80] ss:$8 sps:$4 sm:$0xff]   ;;  %v516_v46 = vld [vmem:[#allocation9 + $0x98] sm:$0xff] }
 0x1c1   : > { %1311 = vmatpush1.bf16.msra.mxu0 %v2736_v56  ;;  %v582_v56 = vld [vmem:[#allocation9 + $0x2a8] sm:$0xff] }
 0x1c2   : > { %1312 = vmatprep.subr.bf16.mxu0 %v2745_v58  ;;  %2298 = vmatpush1.bf16.msra.mxu1 %v3179_v61  ;;  %v3205_v58 = vld [vmem:[#allocation10 + $0x94] ss:$8 sps:$4 sm:$0xff]   ;;  %v2809_v60 = vcombine.high %v578_v54, %v582_v56  ;;  %v586_v61 = vld [vmem:[#allocation9 + $0x2c8] sm:$0xff]  ;;  %v2808_v3 = vcombine.low %v578_v54, %v582_v56 }
 0x1c3   : > { %2299 = vmatprep.subr.bf16.mxu1 %v3184_v62  ;;  %v590_v62 = vld [vmem:[#allocation9 + $0x2e8] sm:$0xff]  ;;  %v528_v54 = vld [vmem:[#allocation9 + $0xf8] sm:$0xff] }
 0x1c4   : > { %v2817_v4 = vcombine.high %v586_v61, %v590_v62  ;;  %v2816_v13 = vcombine.low %v586_v61, %v590_v62  ;;  %v540_v62 = vld [vmem:[#allocation9 + $0x158] sm:$0xff] }
 0x1c5   : > { %1313 = vmatpush1.bf16.msra.mxu0 %v2744_v0  ;;  %v3203_v0 = vld [vmem:[#allocation10 + $0x90] ss:$8 sps:$4 sm:$0xff]  }
 0x1c6   : > { %1314 = vmatprep.subr.bf16.mxu0 %v2753_v2  ;;  %2300 = vmatpush1.bf16.msra.mxu1 %v3182_v6  ;;  %v3208_v2 = vld [vmem:[#allocation10 + $0xa4] ss:$8 sps:$4 sm:$0xff]  }
 0x1c7   : > { %2301 = vmatprep.subr.bf16.mxu1 %v3187_v7  ;;  %v594_v6 = vld [vmem:[#allocation9 + $0x308] sm:$0xff] }
 0x1c8   : > { %v598_v7 = vld [vmem:[#allocation9 + $0x328] sm:$0xff] }
 0x1c9   : > { %1315 = vmatpush1.bf16.msra.mxu0 %v2752_v8  ;;  %v3206_v8 = vld [vmem:[#allocation10 + $0xa0] ss:$8 sps:$4 sm:$0xff]   ;;  %v2825_v14 = vcombine.high %v594_v6, %v598_v7  ;;  %v2824_v21 = vcombine.low %v594_v6, %v598_v7 }
 0x1ca   : > { %1316 = vmatprep.subr.bf16.mxu0 %v2761_v9  ;;  %2302 = vmatpush1.bf16.msra.mxu1 %v3185_v15  ;;  %v3211_v9 = vld [vmem:[#allocation10 + $0xb4] ss:$8 sps:$4 sm:$0xff]   ;;  %v602_v15 = vld [vmem:[#allocation9 + $0x348] sm:$0xff] }
 0x1cb   : > { %2303 = vmatprep.subr.bf16.mxu1 %v3190_v18  ;;  %v606_v18 = vld [vmem:[#allocation9 + $0x368] sm:$0xff] }
 0x1cc   : > { %v2833_v24 = vcombine.high %v602_v15, %v606_v18 }
 0x1cd   : > { %1317 = vmatpush1.bf16.msra.mxu0 %v2760_v19  ;;  %v3209_v19 = vld [vmem:[#allocation10 + $0xb0] ss:$8 sps:$4 sm:$0xff]  }
 0x1ce   : > { %1318 = vmatprep.subr.bf16.mxu0 %v2769_v20  ;;  %2304 = vmatpush1.bf16.msra.mxu1 %v3188_v25  ;;  %v3214_v20 = vld [vmem:[#allocation10 + $0xc4] ss:$8 sps:$4 sm:$0xff]  }
 0x1cf   : > { %2305 = vmatprep.subr.bf16.mxu1 %v3193_v26  ;;  %v610_v25 = vld [vmem:[#allocation9 + $0x388] sm:$0xff] }
 0x1d0   : > { %v614_v26 = vld [vmem:[#allocation9 + $0x3a8] sm:$0xff] }
 0x1d1   : > { %1319 = vmatpush1.bf16.msra.mxu0 %v2768_v27  ;;  %v3212_v27 = vld [vmem:[#allocation10 + $0xc0] ss:$8 sps:$4 sm:$0xff]   ;;  %v2841_v30 = vcombine.high %v610_v25, %v614_v26 }
 0x1d2   : > { %1320 = vmatprep.subr.bf16.mxu0 %v2777_v28  ;;  %2306 = vmatpush1.bf16.msra.mxu1 %v3191_v32  ;;  %v2832_v28 = vcombine.low %v602_v15, %v606_v18  ;;  %v622_v32 = vld [vmem:[#allocation9 + $0x3e8] sm:$0xff] }
 0x1d3   : > { %2307 = vmatprep.subr.bf16.mxu1 %v3196_v34  ;;  %v2840_v34 = vcombine.low %v610_v25, %v614_v26  ;;  %v2848_v38 = vcombine.low %v618_v31, %v622_v32 }
 0x1d5   : > { %1321 = vmatpush1.bf16.msra.mxu0 %v2776_v35  ;;  %v2849_v35 = vcombine.high %v618_v31, %v622_v32  ;;  %v3221_v31 = vld [vmem:[#allocation10 + $0xf0] ss:$8 sps:$4 sm:$0xff]  }
 0x1d6   : > { %1322 = vmatprep.subr.bf16.mxu0 %v2785_v36  ;;  %2308 = vmatpush1.bf16.msra.mxu1 %v3194_v39  ;;  %v500_v36 = vld [vmem:[#allocation9 + $0x18] sm:$0xff] }
 0x1d7   : > { %2309 = vmatprep.subr.bf16.mxu1 %v3199_v40  ;;  %v2733_v39 = vcombine.high %v500_v36, %v504_v37  ;;  %v508_v40 = vld [vmem:[#allocation9 + $0x58] sm:$0xff] }
 0x1d9   : > { %1323 = vmatpush1.bf16.msra.mxu0 %v2784_v41  ;;  %v512_v41 = vld [vmem:[#allocation9 + $0x78] sm:$0xff] }
 0x1da   : > { %1324 = vmatprep.subr.bf16.mxu0 %v2793_v42  ;;  %2310 = vmatpush1.bf16.msra.mxu1 %v3197_v49  ;;  %v2732_v42 = vcombine.low %v500_v36, %v504_v37  ;;  %v2741_v44 = vcombine.high %v508_v40, %v512_v41  ;;  %v520_v49 = vld [vmem:[#allocation9 + $0xb8] sm:$0xff] }
 0x1db   : > { %2311 = vmatprep.subr.bf16.mxu1 %v3202_v50  ;;  %v2740_v50 = vcombine.low %v508_v40, %v512_v41  ;;  %v2748_v56 = vcombine.low %v516_v46, %v520_v49  ;;  %v580_v36 = vld [vmem:[#allocation9 + $0x298] sm:$0xff] }
 0x1dc   : > { %v584_v37 = vld [vmem:[#allocation9 + $0x2b8] sm:$0xff] }
 0x1dd   : > { %1325 = vmatpush1.bf16.msra.mxu0 %v2792_v51  ;;  %v2749_v51 = vcombine.high %v516_v46, %v520_v49  ;;  %v588_v40 = vld [vmem:[#allocation9 + $0x2d8] sm:$0xff] }
 0x1de   : > { %1326 = vmatprep.subr.bf16.mxu0 %v2801_v52  ;;  %2312 = vmatpush1.bf16.msra.mxu1 %v3200_v57  ;;  %v524_v52 = vld [vmem:[#allocation9 + $0xd8] sm:$0xff] }
 0x1df   : > { %2313 = vmatprep.subr.bf16.mxu1 %v3205_v58  ;;  %v2757_v57 = vcombine.high %v524_v52, %v528_v54  ;;  %v532_v58 = vld [vmem:[#allocation9 + $0x118] sm:$0xff] }
 0x1e0   : > { %v592_v41 = vld [vmem:[#allocation9 + $0x2f8] sm:$0xff] }
 0x1e1   : > { %1327 = vmatpush1.bf16.msra.mxu0 %v2800_v59  ;;  %v536_v59 = vld [vmem:[#allocation9 + $0x138] sm:$0xff] }
 0x1e2   : > { %1328 = vmatprep.subr.bf16.mxu0 %v2809_v60  ;;  %2314 = vmatpush1.bf16.msra.mxu1 %v3203_v0  ;;  %v2756_v60 = vcombine.low %v524_v52, %v528_v54  ;;  %v2765_v61 = vcombine.high %v532_v58, %v536_v59  ;;  %v544_v0 = vld [vmem:[#allocation9 + $0x178] sm:$0xff] }
 0x1e3   : > { %2315 = vmatprep.subr.bf16.mxu1 %v3208_v2  ;;  %v2764_v2 = vcombine.low %v532_v58, %v536_v59  ;;  %v2772_v6 = vcombine.low %v540_v62, %v544_v0  ;;  %v596_v46 = vld [vmem:[#allocation9 + $0x318] sm:$0xff] }
 0x1e4   : > { %v600_v49 = vld [vmem:[#allocation9 + $0x338] sm:$0xff] }
 0x1e5   : > { %1329 = vmatpush1.bf16.msra.mxu0 %v2808_v3  ;;  %v548_v3 = vld [vmem:[#allocation9 + $0x198] sm:$0xff] }
 0x1e6   : > { %1330 = vmatprep.subr.bf16.mxu0 %v2817_v4  ;;  %2316 = vmatpush1.bf16.msra.mxu1 %v3206_v8  ;;  %v552_v4 = vld [vmem:[#allocation9 + $0x1b8] sm:$0xff] }
 0x1e7   : > { %2317 = vmatprep.subr.bf16.mxu1 %v3211_v9  ;;  %v2781_v7 = vcombine.high %v548_v3, %v552_v4  ;;  %v3217_v8 = vld [vmem:[#allocation10 + $0xd4] ss:$8 sps:$4 sm:$0xff]   ;;  %v2780_v15 = vcombine.low %v548_v3, %v552_v4 }
 0x1e8   : > { %v556_v9 = vld [vmem:[#allocation9 + $0x1d8] sm:$0xff] }
 0x1e9   : > { %1331 = vmatpush1.bf16.msra.mxu0 %v2816_v13  ;;  %v560_v13 = vld [vmem:[#allocation9 + $0x1f8] sm:$0xff] }
 0x1ea   : > { %1332 = vmatprep.subr.bf16.mxu0 %v2825_v14  ;;  %2318 = vmatpush1.bf16.msra.mxu1 %v3209_v19  ;;  %v3215_v14 = vld [vmem:[#allocation10 + $0xd0] ss:$8 sps:$4 sm:$0xff]   ;;  %v2789_v18 = vcombine.high %v556_v9, %v560_v13  ;;  %v3220_v19 = vld [vmem:[#allocation10 + $0xe4] ss:$8 sps:$4 sm:$0xff]   ;;  %v2788_v25 = vcombine.low %v556_v9, %v560_v13 }
 0x1eb   : > { %2319 = vmatprep.subr.bf16.mxu1 %v3214_v20  ;;  %v564_v20 = vld [vmem:[#allocation9 + $0x218] sm:$0xff] }
 0x1ec   : > { %v604_v52 = vld [vmem:[#allocation9 + $0x358] sm:$0xff] }
 0x1ed   : > { %1333 = vmatpush1.bf16.msra.mxu0 %v2824_v21  ;;  %v568_v21 = vld [vmem:[#allocation9 + $0x238] sm:$0xff] }
 0x1ee   : > { %1334 = vmatprep.subr.bf16.mxu0 %v2833_v24  ;;  %2320 = vmatpush1.bf16.msra.mxu1 %v3212_v27  ;;  %v3218_v24 = vld [vmem:[#allocation10 + $0xe0] ss:$8 sps:$4 sm:$0xff]   ;;  %v2797_v26 = vcombine.high %v564_v20, %v568_v21  ;;  %v3223_v27 = vld [vmem:[#allocation10 + $0xf4] ss:$8 sps:$4 sm:$0xff]   ;;  %v2796_v32 = vcombine.low %v564_v20, %v568_v21 }
 0x1ef   : > { %2321 = vmatprep.subr.bf16.mxu1 %v3217_v8  ;;  %v608_v54 = vld [vmem:[#allocation9 + $0x378] sm:$0xff] }
 0x1f0   : > { %v612_v58 = vld [vmem:[#allocation9 + $0x398] sm:$0xff] }
 0x1f1   : > { %1335 = vmatpush1.bf16.msra.mxu0 %v2832_v28  ;;  %v572_v28 = vld [vmem:[#allocation9 + $0x258] sm:$0xff] }
 0x1f2   : > { %1336 = vmatprep.subr.bf16.mxu0 %v2841_v30  ;;  %2322 = vmatpush1.bf16.msra.mxu1 %v3215_v14  ;;  %v576_v30 = vld [vmem:[#allocation9 + $0x278] sm:$0xff] }
 0x1f3   : > { %2323 = vmatprep.subr.bf16.mxu1 %v3220_v19  ;;  %v616_v59 = vld [vmem:[#allocation9 + $0x3b8] sm:$0xff] }
 0x1f5   : > { %1337 = vmatpush1.bf16.msra.mxu0 %v2840_v34  ;;  %v2805_v34 = vcombine.high %v572_v28, %v576_v30 }
 0x1f6   : > { %1338 = vmatprep.subr.bf16.mxu0 %v2849_v35  ;;  %2324 = vmatpush1.bf16.msra.mxu1 %v3218_v24  ;;  %v3226_v35 = vld [vmem:[#allocation10 + $0x104] ss:$8 sps:$4 sm:$0xff]  }
 0x1f7   : > { %2325 = vmatprep.subr.bf16.mxu1 %v3223_v27 }
 0x1f9   : > { %1339 = vmatpush1.bf16.msra.mxu0 %v2848_v38  ;;  %v2804_v38 = vcombine.low %v572_v28, %v576_v30 }
 0x1fa   : > { %1394 = vmatprep.subr.bf16.mxu0 %v2733_v39  ;;  %2326 = vmatpush1.bf16.msra.mxu1 %v3221_v31  ;;  %v2813_v39 = vcombine.high %v580_v36, %v584_v37 }
 0x1fb   : > { %2338 = vmatprep.subr.bf16.mxu1 %v3226_v35 }
 0x1fc   : > { %1341 = vmatmul.mubr.bf16.vlgmr.msra.gmra.mrb[8].mxu0 %v3956_v48 }
 0x1fd   : > { %1395 = vmatpush1.bf16.msra.mxu0 %v2732_v42  ;;  %1426 = vmatprep.mubr.bf16.mxu0 %v3954_v47  ;;  %v2773_v47 = vcombine.high %v540_v62, %v544_v0  ;;  %v2812_v42 = vcombine.low %v580_v36, %v584_v37  ;;  %v620_v62 = vld [vmem:[#allocation9 + $0x3d8] sm:$0xff] }
 0x1fe   : > { %1396 = vmatprep.subr.bf16.mxu0 %v2741_v44  ;;  %v2821_v44 = vcombine.high %v588_v40, %v592_v41  ;;  %v624_v0 = vld [vmem:[#allocation9 + $0x3f8] sm:$0xff] }
 0x1ff   : > { %v2852_v3 = vcombine.low %v620_v62, %v624_v0 }
 0x201   : > { %1397 = vmatpush1.bf16.msra.mxu0 %v2740_v50  ;;  %v2820_v50 = vcombine.low %v588_v40, %v592_v41  ;;  %v3229_v41 = vld [vmem:[#allocation10 + $0x114] ss:$8 sps:$4 sm:$0xff]  }
 0x202   : > { %1398 = vmatprep.subr.bf16.mxu0 %v2749_v51  ;;  %v2829_v51 = vcombine.high %v596_v46, %v600_v49 }
 0x205   : > { %1399 = vmatpush1.bf16.msra.mxu0 %v2748_v56  ;;  %v2828_v56 = vcombine.low %v596_v46, %v600_v49  ;;  %v3230_v46 = vld [vmem:[#allocation10 + $0x120] ss:$8 sps:$4 sm:$0xff]   ;;  %v3235_v49 = vld [vmem:[#allocation10 + $0x134] ss:$8 sps:$4 sm:$0xff]  }
 0x206   : > { %1400 = vmatprep.subr.bf16.mxu0 %v2757_v57  ;;  %v2837_v57 = vcombine.high %v604_v52, %v608_v54 }
 0x209   : > { %1401 = vmatpush1.bf16.msra.mxu0 %v2756_v60  ;;  %v2836_v60 = vcombine.low %v604_v52, %v608_v54  ;;  %v3236_v52 = vld [vmem:[#allocation10 + $0x140] ss:$8 sps:$4 sm:$0xff]   ;;  %v3241_v54 = vld [vmem:[#allocation10 + $0x154] ss:$8 sps:$4 sm:$0xff]  }
 0x20a   : > { %1402 = vmatprep.subr.bf16.mxu0 %v2765_v61  ;;  %v2845_v61 = vcombine.high %v612_v58, %v616_v59 }
 0x20d   : > { %1403 = vmatpush1.bf16.msra.mxu0 %v2764_v2  ;;  %v2844_v2 = vcombine.low %v612_v58, %v616_v59  ;;  %v3242_v58 = vld [vmem:[#allocation10 + $0x160] ss:$8 sps:$4 sm:$0xff]   ;;  %v3247_v59 = vld [vmem:[#allocation10 + $0x174] ss:$8 sps:$4 sm:$0xff]  }
 0x20e   : > { %1404 = vmatprep.subr.bf16.mxu0 %v2773_v47  ;;  %v2853_v47 = vcombine.high %v620_v62, %v624_v0  ;;  %v3248_v62 = vld [vmem:[#allocation10 + $0x180] ss:$8 sps:$4 sm:$0xff]   ;;  %v3253_v0 = vld [vmem:[#allocation10 + $0x194] ss:$8 sps:$4 sm:$0xff]  }
 0x211   : > { %1405 = vmatpush1.bf16.msra.mxu0 %v2772_v6 }
 0x212   : > { %1406 = vmatprep.subr.bf16.mxu0 %v2781_v7 }
 0x215   : > { %1407 = vmatpush1.bf16.msra.mxu0 %v2780_v15 }
 0x216   : > { %1408 = vmatprep.subr.bf16.mxu0 %v2789_v18 }
 0x219   : > { %1409 = vmatpush1.bf16.msra.mxu0 %v2788_v25 }
 0x21a   : > { %1410 = vmatprep.subr.bf16.mxu0 %v2797_v26 }
 0x21d   : > { %1411 = vmatpush1.bf16.msra.mxu0 %v2796_v32 }
 0x21e   : > { %1412 = vmatprep.subr.bf16.mxu0 %v2805_v34 }
 0x221   : > { %1413 = vmatpush1.bf16.msra.mxu0 %v2804_v38 }
 0x222   : > { %1414 = vmatprep.subr.bf16.mxu0 %v2813_v39  ;;  %v3224_v39 = vld [vmem:[#allocation10 + $0x100] ss:$8 sps:$4 sm:$0xff]  }
 0x225   : > { %1415 = vmatpush1.bf16.msra.mxu0 %v2812_v42  ;;  %v3227_v42 = vld [vmem:[#allocation10 + $0x110] ss:$8 sps:$4 sm:$0xff]  }
 0x226   : > { %1416 = vmatprep.subr.bf16.mxu0 %v2821_v44  ;;  %v3232_v44 = vld [vmem:[#allocation10 + $0x124] ss:$8 sps:$4 sm:$0xff]  }
 0x229   : > { %1417 = vmatpush1.bf16.msra.mxu0 %v2820_v50  ;;  %v3233_v50 = vld [vmem:[#allocation10 + $0x130] ss:$8 sps:$4 sm:$0xff]  }
 0x22a   : > { %1418 = vmatprep.subr.bf16.mxu0 %v2829_v51  ;;  %v3238_v51 = vld [vmem:[#allocation10 + $0x144] ss:$8 sps:$4 sm:$0xff]  }
 0x22d   : > { %1419 = vmatpush1.bf16.msra.mxu0 %v2828_v56  ;;  %v3239_v56 = vld [vmem:[#allocation10 + $0x150] ss:$8 sps:$4 sm:$0xff]  }
 0x22e   : > { %1420 = vmatprep.subr.bf16.mxu0 %v2837_v57  ;;  %v3244_v57 = vld [vmem:[#allocation10 + $0x164] ss:$8 sps:$4 sm:$0xff]  }
 0x231   : > { %1421 = vmatpush1.bf16.msra.mxu0 %v2836_v60  ;;  %v3245_v60 = vld [vmem:[#allocation10 + $0x170] ss:$8 sps:$4 sm:$0xff]  }
 0x232   : > { %1422 = vmatprep.subr.bf16.mxu0 %v2845_v61  ;;  %v3250_v61 = vld [vmem:[#allocation10 + $0x184] ss:$8 sps:$4 sm:$0xff]  }
 0x235   : > { %1423 = vmatpush1.bf16.msra.mxu0 %v2844_v2  ;;  %v3251_v2 = vld [vmem:[#allocation10 + $0x190] ss:$8 sps:$4 sm:$0xff]  }
 0x236   : > { %1424 = vmatprep.subr.bf16.mxu0 %v2853_v47  ;;  %v3256_v47 = vld [vmem:[#allocation10 + $0x1a4] ss:$8 sps:$4 sm:$0xff]  }
 0x239   : > { %1425 = vmatpush1.bf16.msra.mxu0 %v2852_v3  ;;  %v3254_v3 = vld [vmem:[#allocation10 + $0x1a0] ss:$8 sps:$4 sm:$0xff]  }
 0x23a   : > { %3022 = vmatprep.subr.bf16.mxu0 %v3904_v5  ;;  %v1439_v5 = vlaneseq }
 0x23c   : > { %1427 = vmatmul.mubr.bf16.vlgmr.msra.gmra.mrb[12].mxu0 %v3956_v48 }
 0x242   : > { %3024 = vmatpush1.bf16.xpose.msra.mxu0 %v3906_v10  ;;  %v3982_v10 = vshrl.u32 %v1439_v5, 7  ;;  %v3259_v5 = vld [vmem:[#allocation10 + $0x1b4] ss:$8 sps:$4 sm:$0xff]  }
 0x243   : > { %3026 = vmatprep.subr.bf16.mxu0 %v3908_v11 }
 0x244   : > { %v1441_v11 = vsub.s32 0, %v3982_v10 }
 0x24a   : > { %3028 = vmatpush1.bf16.xpose.msra.mxu0 %v3912_v16  ;;  %v1457_v16 = vsub.s32 4, %v3982_v10 }
 0x24b   : > { %3030 = vmatprep.subr.bf16.mxu0 %v3915_v17  ;;  %v3989_v17 = vld [vmem:[%s4080_s3] sm:$0xff] }
 0x252   : > { %3032 = vmatpush1.bf16.xpose.msra.mxu0 %v3918_v22  ;;  %v1445_v22 = vsub.s32 1, %v3982_v10 }
 0x253   : > { %3034 = vmatprep.subr.bf16.mxu0 %v3921_v23  ;;  %v1461_v23 = vsub.s32 5, %v3982_v10 }
 0x25a   : > { %3036 = vmatpush1.bf16.xpose.msra.mxu0 %v3924_v29  ;;  %v1442_v29 = vrot.slane %v3989_v17, %v1441_v11 }
 0x25b   : > { %3038 = vmatprep.subr.bf16.mxu0 %v3927_v33  ;;  %v1458_v33 = vrot.slane %v3989_v17, %v1457_v16  ;;  %v3257_v16 = vld [vmem:[#allocation10 + $0x1b0] ss:$8 sps:$4 sm:$0xff]  }
 0x262   : > { %3040 = vmatpush1.bf16.xpose.msra.mxu0 %v3930_v43  ;;  %v1446_v43 = vrot.slane %v3989_v17, %v1445_v22 }
 0x263   : > { %3042 = vmatprep.subr.bf16.mxu0 %v3933_v45  ;;  %v1462_v45 = vrot.slane %v3989_v17, %v1461_v23  ;;  %v3262_v23 = vld [vmem:[#allocation10 + $0x1c4] ss:$8 sps:$4 sm:$0xff]  }
 0x26a   : > { %3044 = vmatpush1.bf16.xpose.msra.mxu0 %v3936_v53 }
 0x26b   : > { %3046 = vmatprep.subr.bf16.mxu0 %v3939_v55 }
 0x272   : > { %3048 = vmatpush1.bf16.xpose.msra.mxu0 %v3942_v63 }
 0x273   : > { %3050 = vmatprep.subr.bf16.mxu0 %v3945_v1 }
 0x27a   : > { %3052 = vmatpush1.bf16.xpose.msra.mxu0 %v3948_v12 }
 0x28f   : > { %v1299_v53 = vpop.f32.mrb[4].mxu0  ;;  %v1385_v55 = vpop.f32.mrb[0].mxu1 }
 0x290   : > { %v1479_v63 = vadd.f32 %v1442_v29, %v1299_v53  ;;  %v1483_v1 = vadd.f32 %v1458_v33, %v1385_v55  ;;  %v1301_v12 = vpop.f32.mrb[5].mxu0  ;;  %v1387_v48 = vpop.f32.mrb[1].mxu1  ;;  %v1449_v29 = vsub.s32 2, %v3982_v10  ;;  %v3260_v33 = vld [vmem:[#allocation10 + $0x1c0] ss:$8 sps:$4 sm:$0xff]  }
 0x291   : > { %v1480_v4 = vadd.f32 %v1446_v43, %v1301_v12  ;;  %v1484_v6 = vadd.f32 %v1462_v45, %v1387_v48  ;;  %v1303_v7 = vpop.f32.mrb[6].mxu0  ;;  %v1389_v8 = vpop.f32.mrb[2].mxu1  ;;  %v1453_v43 = vsub.s32 3, %v3982_v10  ;;  %v3265_v45 = vld [vmem:[#allocation10 + $0x1d4] ss:$8 sps:$4 sm:$0xff]  }
 0x292   : > { %v1495_v9 = vadd.f32 %v1479_v63, %v1303_v7  ;;  %v1499_v13 = vadd.f32 %v1483_v1, %v1389_v8  ;;  %v1305_v14 = vpop.f32.mrb[7].mxu0  ;;  %v1391_v15 = vpop.f32.mrb[3].mxu1  ;;  %v1487_v20 = vmax.f32 %v1479_v63, 0.0  ;;  %v1491_v21 = vmax.f32 %v1483_v1, 0.0  ;;  %v3263_v63 = vld [vmem:[#allocation10 + $0x1d0] ss:$8 sps:$4 sm:$0xff]  }
 0x293   : > { %v1496_v18 = vadd.f32 %v1480_v4, %v1305_v14  ;;  %v1500_v19 = vadd.f32 %v1484_v6, %v1391_v15  ;;  %v1488_v26 = vmax.f32 %v1480_v4, 0.0  ;;  %v1492_v27 = vmax.f32 %v1484_v6, 0.0  ;;  %v3268_v1 = vld [vmem:[#allocation10 + $0x1e4] ss:$8 sps:$4 sm:$0xff]   ;;  %v3266_v8 = vld [vmem:[#allocation10 + $0x1e0] ss:$8 sps:$4 sm:$0xff]  }
 0x294   : > { %v1503_v24 = vmax.f32 %v1495_v9, 0.0  ;;  %v1507_v25 = vmax.f32 %v1499_v13, 0.0  ;;  %v1450_v53 = vrot.slane %v3989_v17, %v1449_v29  ;;  %v1454_v55 = vrot.slane %v3989_v17, %v1453_v43  ;;  %v3271_v14 = vld [vmem:[#allocation10 + $0x1f4] ss:$8 sps:$4 sm:$0xff]   ;;  %v3316_v29 = vld [vmem:[#allocation10 + $0x2e4] ss:$8 sps:$4 sm:$0xff]  }
 0x295   : > { %v1504_v28 = vmax.f32 %v1496_v18, 0.0  ;;  %v1508_v30 = vmax.f32 %v1500_v19, 0.0 }
 0x296   : > { %v1511_v31 = vsub.f32 %v1503_v24, %v1487_v20  ;;  %v1515_v32 = vsub.f32 %v1507_v25, %v1491_v21  ;;  %v3269_v24 = vld [vmem:[#allocation10 + $0x1f0] ss:$8 sps:$4 sm:$0xff]  }
 0x297   : > { %v1512_v34 = vsub.f32 %v1504_v28, %v1488_v26  ;;  %v1516_v35 = vsub.f32 %v1508_v30, %v1492_v27 }
 0x298   : > { %v1519_v36 = vpack.c.bf16 %v1511_v31, %v1487_v20  ;;  %v4001_v37 = vpack.c.bf16 %v1515_v32, %v1491_v21  ;;  %v3272_v31 = vld [vmem:[#allocation10 + $0x200] ss:$8 sps:$4 sm:$0xff]   ;;  %v3277_v32 = vld [vmem:[#allocation10 + $0x214] ss:$8 sps:$4 sm:$0xff]  }
 0x299   : > { %v1520_v38 = vpack.c.bf16 %v1512_v34, %v1488_v26  ;;  %v4003_v40 = vpack.c.bf16 %v1516_v35, %v1492_v27  ;;  %v3274_v26 = vld [vmem:[#allocation10 + $0x204] ss:$8 sps:$4 sm:$0xff]   ;;  %v3275_v34 = vld [vmem:[#allocation10 + $0x210] ss:$8 sps:$4 sm:$0xff]  }
 0x29a   : > { %v3280_v35 = vld [vmem:[#allocation10 + $0x224] ss:$8 sps:$4 sm:$0xff]  }
 0x29b   : > { %2327 = vmatprep.mubr.bf16.mxu1 %v1520_v38  ;;  %v3283_v38 = vld [vmem:[#allocation10 + $0x234] ss:$8 sps:$4 sm:$0xff]  }
 0x29c   : > { %2328 = vmatmul.mubr.bf16.vlgmr.msra.gmra.mrb[4].mxu1 %v1519_v36  ;;  %v3278_v36 = vld [vmem:[#allocation10 + $0x220] ss:$8 sps:$4 sm:$0xff]  }
 0x29d   : > { %2339 = vmatpush1.bf16.msra.mxu1 %v3224_v39  ;;  %v3281_v39 = vld [vmem:[#allocation10 + $0x230] ss:$8 sps:$4 sm:$0xff]  }
 0x29e   : > { %2340 = vmatprep.subr.bf16.mxu1 %v3229_v41  ;;  %v3286_v41 = vld [vmem:[#allocation10 + $0x244] ss:$8 sps:$4 sm:$0xff]  }
 0x2a1   : > { %2341 = vmatpush1.bf16.msra.mxu1 %v3227_v42  ;;  %v3284_v42 = vld [vmem:[#allocation10 + $0x240] ss:$8 sps:$4 sm:$0xff]  }
 0x2a2   : > { %2342 = vmatprep.subr.bf16.mxu1 %v3232_v44  ;;  %v3289_v44 = vld [vmem:[#allocation10 + $0x254] ss:$8 sps:$4 sm:$0xff]  }
 0x2a5   : > { %2343 = vmatpush1.bf16.msra.mxu1 %v3230_v46  ;;  %v3287_v46 = vld [vmem:[#allocation10 + $0x250] ss:$8 sps:$4 sm:$0xff]  }
 0x2a6   : > { %2344 = vmatprep.subr.bf16.mxu1 %v3235_v49  ;;  %v3292_v49 = vld [vmem:[#allocation10 + $0x264] ss:$8 sps:$4 sm:$0xff]  }
 0x2a9   : > { %2345 = vmatpush1.bf16.msra.mxu1 %v3233_v50  ;;  %v3295_v50 = vld [vmem:[#allocation10 + $0x274] ss:$8 sps:$4 sm:$0xff]  }
 0x2aa   : > { %2346 = vmatprep.subr.bf16.mxu1 %v3238_v51  ;;  %v3293_v51 = vld [vmem:[#allocation10 + $0x270] ss:$8 sps:$4 sm:$0xff]  }
 0x2ad   : > { %2347 = vmatpush1.bf16.msra.mxu1 %v3236_v52  ;;  %v3298_v52 = vld [vmem:[#allocation10 + $0x284] ss:$8 sps:$4 sm:$0xff]  }
 0x2ae   : > { %2348 = vmatprep.subr.bf16.mxu1 %v3241_v54  ;;  %v3296_v54 = vld [vmem:[#allocation10 + $0x280] ss:$8 sps:$4 sm:$0xff]  }
 0x2b1   : > { %2349 = vmatpush1.bf16.msra.mxu1 %v3239_v56  ;;  %v3301_v56 = vld [vmem:[#allocation10 + $0x294] ss:$8 sps:$4 sm:$0xff]  }
 0x2b2   : > { %2350 = vmatprep.subr.bf16.mxu1 %v3244_v57  ;;  %v3299_v57 = vld [vmem:[#allocation10 + $0x290] ss:$8 sps:$4 sm:$0xff]  }
 0x2b5   : > { %2351 = vmatpush1.bf16.msra.mxu1 %v3242_v58  ;;  %v3304_v58 = vld [vmem:[#allocation10 + $0x2a4] ss:$8 sps:$4 sm:$0xff]  }
 0x2b6   : > { %2352 = vmatprep.subr.bf16.mxu1 %v3247_v59  ;;  %v3302_v59 = vld [vmem:[#allocation10 + $0x2a0] ss:$8 sps:$4 sm:$0xff]  }
 0x2b9   : > { %2353 = vmatpush1.bf16.msra.mxu1 %v3245_v60  ;;  %v3307_v60 = vld [vmem:[#allocation10 + $0x2b4] ss:$8 sps:$4 sm:$0xff]  }
 0x2ba   : > { %2354 = vmatprep.subr.bf16.mxu1 %v3250_v61  ;;  %v3305_v61 = vld [vmem:[#allocation10 + $0x2b0] ss:$8 sps:$4 sm:$0xff]  }
 0x2bd   : > { %2355 = vmatpush1.bf16.msra.mxu1 %v3248_v62  ;;  %v3310_v62 = vld [vmem:[#allocation10 + $0x2c4] ss:$8 sps:$4 sm:$0xff]  }
 0x2be   : > { %2356 = vmatprep.subr.bf16.mxu1 %v3253_v0  ;;  %v1465_v0 = vsub.s32 6, %v3982_v10 }
 0x2c1   : > { %2357 = vmatpush1.bf16.msra.mxu1 %v3251_v2  ;;  %v3308_v2 = vld [vmem:[#allocation10 + $0x2c0] ss:$8 sps:$4 sm:$0xff]  }
 0x2c2   : > { %2358 = vmatprep.subr.bf16.mxu1 %v3256_v47  ;;  %v1469_v47 = vsub.s32 7, %v3982_v10 }
 0x2c5   : > { %2359 = vmatpush1.bf16.msra.mxu1 %v3254_v3  ;;  %v3313_v3 = vld [vmem:[#allocation10 + $0x2d4] ss:$8 sps:$4 sm:$0xff]  }
 0x2c6   : > { %2360 = vmatprep.subr.bf16.mxu1 %v3259_v5  ;;  %v1466_v5 = vrot.slane %v3989_v17, %v1465_v0 }
 0x2c9   : > { %2361 = vmatpush1.bf16.msra.mxu1 %v3257_v16  ;;  %v1470_v16 = vrot.slane %v3989_v17, %v1469_v47  ;;  %v3317_v17 = vld [vmem:[#allocation10 + $0x2f0] ss:$8 sps:$4 sm:$0xff]  }
 0x2ca   : > { %2362 = vmatprep.subr.bf16.mxu1 %v3262_v23  ;;  %v3311_v23 = vld [vmem:[#allocation10 + $0x2d0] ss:$8 sps:$4 sm:$0xff]  }
 0x2cd   : > { %2363 = vmatpush1.bf16.msra.mxu1 %v3260_v33 }
 0x2ce   : > { %2364 = vmatprep.subr.bf16.mxu1 %v3265_v45 }
 0x2cf   : > { %v1342_v12 = vpop.f32.mrb[8].mxu0 }
 0x2d0   : > { %v1481_v48 = vadd.f32 %v1450_v53, %v1342_v12  ;;  %v1344_v4 = vpop.f32.mrb[9].mxu0 }
 0x2d1   : > { %v1482_v6 = vadd.f32 %v1454_v55, %v1344_v4  ;;  %v1346_v7 = vpop.f32.mrb[10].mxu0  ;;  %2365 = vmatpush1.bf16.msra.mxu1 %v3263_v63  ;;  %v3314_v63 = vld [vmem:[#allocation10 + $0x2e0] ss:$8 sps:$4 sm:$0xff]  }
 0x2d2   : > { %v1497_v9 = vadd.f32 %v1481_v48, %v1346_v7  ;;  %v1348_v13 = vpop.f32.mrb[11].mxu0  ;;  %2366 = vmatprep.subr.bf16.mxu1 %v3268_v1  ;;  %v1489_v18 = vmax.f32 %v1481_v48, 0.0  ;;  %v3319_v48 = vld [vmem:[#allocation10 + $0x2f4] ss:$8 sps:$4 sm:$0xff]  }
 0x2d3   : > { %v1498_v15 = vadd.f32 %v1482_v6, %v1348_v13  ;;  %v1490_v20 = vmax.f32 %v1482_v6, 0.0 }
 0x2d4   : > { %v1505_v19 = vmax.f32 %v1497_v9, 0.0 }
 0x2d5   : > { %v1506_v21 = vmax.f32 %v1498_v15, 0.0  ;;  %2367 = vmatpush1.bf16.msra.mxu1 %v3266_v8 }
 0x2d6   : > { %v1513_v25 = vsub.f32 %v1505_v19, %v1489_v18  ;;  %2368 = vmatprep.subr.bf16.mxu1 %v3271_v14  ;;  %v3322_v14 = vld [vmem:[#allocation10 + $0x304] ss:$8 sps:$4 sm:$0xff]   ;;  %v3320_v19 = vld [vmem:[#allocation10 + $0x300] ss:$8 sps:$4 sm:$0xff]  }
 0x2d7   : > { %v1514_v27 = vsub.f32 %v1506_v21, %v1490_v20  ;;  %v3325_v21 = vld [vmem:[#allocation10 + $0x314] ss:$8 sps:$4 sm:$0xff]  }
 0x2d8   : > { %v1521_v28 = vpack.c.bf16 %v1513_v25, %v1489_v18  ;;  %v3328_v25 = vld [vmem:[#allocation10 + $0x324] ss:$8 sps:$4 sm:$0xff]  }
 0x2d9   : > { %2369 = vmatpush1.bf16.msra.mxu1 %v3269_v24  ;;  %v1522_v30 = vpack.c.bf16 %v1514_v27, %v1490_v20  ;;  %v3323_v24 = vld [vmem:[#allocation10 + $0x310] ss:$8 sps:$4 sm:$0xff]   ;;  %v3331_v27 = vld [vmem:[#allocation10 + $0x334] ss:$8 sps:$4 sm:$0xff]  }
 0x2da   : > { %2381 = vmatprep.subr.bf16.mxu1 %v3274_v26  ;;  %v3326_v26 = vld [vmem:[#allocation10 + $0x320] ss:$8 sps:$4 sm:$0xff]  }
 0x2db   : > { %2370 = vmatprep.mubr.bf16.mxu1 %v1522_v30  ;;  %v3334_v30 = vld [vmem:[#allocation10 + $0x344] ss:$8 sps:$4 sm:$0xff]  }
 0x2dc   : > { %2371 = vmatmul.mubr.bf16.vlgmr.msra.gmra.mrb[4].mxu1 %v1521_v28  ;;  %v3329_v28 = vld [vmem:[#allocation10 + $0x330] ss:$8 sps:$4 sm:$0xff]  }
 0x2dd   : > { %2382 = vmatpush1.bf16.msra.mxu1 %v3272_v31  ;;  %2413 = vmatprep.mubr.bf16.mxu1 %v4003_v40  ;;  %v3290_v40 = vld [vmem:[#allocation10 + $0x260] ss:$8 sps:$4 sm:$0xff]  }
 0x2de   : > { %2383 = vmatprep.subr.bf16.mxu1 %v3277_v32  ;;  %v3332_v31 = vld [vmem:[#allocation10 + $0x340] ss:$8 sps:$4 sm:$0xff]   ;;  %v3337_v32 = vld [vmem:[#allocation10 + $0x354] ss:$8 sps:$4 sm:$0xff]  }
 0x2e1   : > { %2384 = vmatpush1.bf16.msra.mxu1 %v3275_v34  ;;  %v3335_v34 = vld [vmem:[#allocation10 + $0x350] ss:$8 sps:$4 sm:$0xff]  }
 0x2e2   : > { %2385 = vmatprep.subr.bf16.mxu1 %v3280_v35  ;;  %v3338_v35 = vld [vmem:[#allocation10 + $0x360] ss:$8 sps:$4 sm:$0xff]  }
 0x2e5   : > { %2386 = vmatpush1.bf16.msra.mxu1 %v3278_v36  ;;  %v3343_v36 = vld [vmem:[#allocation10 + $0x374] ss:$8 sps:$4 sm:$0xff]  }
 0x2e6   : > { %2387 = vmatprep.subr.bf16.mxu1 %v3283_v38  ;;  %v3341_v38 = vld [vmem:[#allocation10 + $0x370] ss:$8 sps:$4 sm:$0xff]  }
 0x2e9   : > { %2388 = vmatpush1.bf16.msra.mxu1 %v3281_v39  ;;  %v3346_v39 = vld [vmem:[#allocation10 + $0x384] ss:$8 sps:$4 sm:$0xff]  }
 0x2ea   : > { %2389 = vmatprep.subr.bf16.mxu1 %v3286_v41  ;;  %v3344_v41 = vld [vmem:[#allocation10 + $0x380] ss:$8 sps:$4 sm:$0xff]  }
 0x2ed   : > { %2390 = vmatpush1.bf16.msra.mxu1 %v3284_v42  ;;  %v3349_v42 = vld [vmem:[#allocation10 + $0x394] ss:$8 sps:$4 sm:$0xff]  }
 0x2ee   : > { %2391 = vmatprep.subr.bf16.mxu1 %v3289_v44  ;;  %v3347_v44 = vld [vmem:[#allocation10 + $0x390] ss:$8 sps:$4 sm:$0xff]  }
 0x2f1   : > { %2392 = vmatpush1.bf16.msra.mxu1 %v3287_v46  ;;  %v3352_v46 = vld [vmem:[#allocation10 + $0x3a4] ss:$8 sps:$4 sm:$0xff]  }
 0x2f2   : > { %2393 = vmatprep.subr.bf16.mxu1 %v3292_v49  ;;  %v3350_v49 = vld [vmem:[#allocation10 + $0x3a0] ss:$8 sps:$4 sm:$0xff]  }
 0x2f5   : > { %2394 = vmatpush1.bf16.msra.mxu1 %v3290_v40  ;;  %v3355_v40 = vld [vmem:[#allocation10 + $0x3b4] ss:$8 sps:$4 sm:$0xff]  }
 0x2f6   : > { %2395 = vmatprep.subr.bf16.mxu1 %v3295_v50  ;;  %v3353_v50 = vld [vmem:[#allocation10 + $0x3b0] ss:$8 sps:$4 sm:$0xff]  }
 0x2f9   : > { %2396 = vmatpush1.bf16.msra.mxu1 %v3293_v51  ;;  %v3358_v51 = vld [vmem:[#allocation10 + $0x3c4] ss:$8 sps:$4 sm:$0xff]  }
 0x2fa   : > { %2397 = vmatprep.subr.bf16.mxu1 %v3298_v52  ;;  %v3356_v52 = vld [vmem:[#allocation10 + $0x3c0] ss:$8 sps:$4 sm:$0xff]  }
 0x2fd   : > { %2398 = vmatpush1.bf16.msra.mxu1 %v3296_v54  ;;  %v3361_v54 = vld [vmem:[#allocation10 + $0x3d4] ss:$8 sps:$4 sm:$0xff]  }
 0x2fe   : > { %2399 = vmatprep.subr.bf16.mxu1 %v3301_v56  ;;  %v3359_v56 = vld [vmem:[#allocation10 + $0x3d0] ss:$8 sps:$4 sm:$0xff]  }
 0x301   : > { %2400 = vmatpush1.bf16.msra.mxu1 %v3299_v57  ;;  %v3364_v57 = vld [vmem:[#allocation10 + $0x3e4] ss:$8 sps:$4 sm:$0xff]  }
 0x302   : > { %2401 = vmatprep.subr.bf16.mxu1 %v3304_v58  ;;  %v3362_v58 = vld [vmem:[#allocation10 + $0x3e0] ss:$8 sps:$4 sm:$0xff]  }
 0x305   : > { %2402 = vmatpush1.bf16.msra.mxu1 %v3302_v59  ;;  %v3367_v59 = vld [vmem:[#allocation10 + $0x3f4] ss:$8 sps:$4 sm:$0xff]  }
 0x306   : > { %2403 = vmatprep.subr.bf16.mxu1 %v3307_v60  ;;  %v3365_v60 = vld [vmem:[#allocation10 + $0x3f0] ss:$8 sps:$4 sm:$0xff]  }
 0x309   : > { %2404 = vmatpush1.bf16.msra.mxu1 %v3305_v61  ;;  %v2467_v61 = vld [vmem:[%s4082_s5] sm:$0x3] }
 0x30a   : > { %2405 = vmatprep.subr.bf16.mxu1 %v3310_v62  ;;  %v2472_v62 = vrot.slane %v2467_v61, %v1441_v11  ;;  %v2476_v0 = vrot.slane %v2467_v61, %v1445_v22  ;;  %v3369_v11 = vld [vmem:[%s3895_s19 + $0x8] sm:$0xff] }
 0x30d   : > { %2406 = vmatpush1.bf16.msra.mxu1 %v3308_v2 }
 0x30e   : > { %2407 = vmatprep.subr.bf16.mxu1 %v3313_v3 }
 0x30f   : > { %v1428_v33 = vpop.f32.mrb[12].mxu0 }
 0x310   : > { %v1485_v43 = vadd.f32 %v1466_v5, %v1428_v33  ;;  %v1430_v45 = vpop.f32.mrb[13].mxu0 }
 0x311   : > { %v1486_v53 = vadd.f32 %v1470_v16, %v1430_v45  ;;  %v1432_v55 = vpop.f32.mrb[14].mxu0  ;;  %2408 = vmatpush1.bf16.msra.mxu1 %v3311_v23  ;;  %v3368_v23 = vld [vmem:[%s3895_s19] sm:$0xff]  ;;  %s3519_s19 = scalar_lea.vmem %s3518_s11, 512 }
 0x312   : > { %v1501_v1 = vadd.f32 %v1485_v43, %v1432_v55  ;;  %v1434_v12 = vpop.f32.mrb[15].mxu0  ;;  %2409 = vmatprep.subr.bf16.mxu1 %v3316_v29  ;;  %v1493_v6 = vmax.f32 %v1485_v43, 0.0  ;;  %p3521_p10 = scmp.lt.s32.totalorder %s3519_s19, %s3513_s1 }
 0x313   : > { %v1502_v4 = vadd.f32 %v1486_v53, %v1434_v12  ;;  %v1494_v8 = vmax.f32 %v1486_v53, 0.0 }
 0x314   : > { %v1509_v7 = vmax.f32 %v1501_v1, 0.0  ;;  %p3522_p2 = por %p3521_p10, %p3520_p4 }
 0x315   : > { %v1510_v9 = vmax.f32 %v1502_v4, 0.0  ;;  %2410 = vmatpush1.bf16.msra.mxu1 %v3314_v63 }
 0x316   : > { %v1517_v13 = vsub.f32 %v1509_v7, %v1493_v6  ;;  %2411 = vmatprep.subr.bf16.mxu1 %v3319_v48  ;;  %p3523_p7 = pnand %p3522_p2, %p3516_p1 }
 0x317   : > { %v1518_v15 = vsub.f32 %v1510_v9, %v1494_v8 }
 0x318   : > { %v4014_v18 = vpack.c.bf16 %v1517_v13, %v1493_v6 }
 0x319   : > { %2412 = vmatpush1.bf16.msra.mxu1 %v3317_v17  ;;  %v1526_v20 = vpack.c.bf16 %v1518_v15, %v1494_v8 }
 0x31a   : > { %2424 = vmatprep.subr.bf16.mxu1 %v3322_v14 }
 0x31c   : > { %2414 = vmatmul.mubr.bf16.vlgmr.msra.gmra.mrb[4].mxu1 %v4001_v37  ;;  %v3340_v37 = vld [vmem:[#allocation10 + $0x364] ss:$8 sps:$4 sm:$0xff]  }
 0x31d   : > { %2425 = vmatpush1.bf16.msra.mxu1 %v3320_v19  ;;  %2456 = vmatprep.mubr.bf16.mxu1 %v1526_v20 }
 0x31e   : > { %2426 = vmatprep.subr.bf16.mxu1 %v3325_v21 }
 0x321   : > { %2427 = vmatpush1.bf16.msra.mxu1 %v3323_v24 }
 0x322   : > { %2428 = vmatprep.subr.bf16.mxu1 %v3328_v25 }
 0x325   : > { %2429 = vmatpush1.bf16.msra.mxu1 %v3326_v26 }
 0x326   : > { %2430 = vmatprep.subr.bf16.mxu1 %v3331_v27 }
 0x329   : > { %2431 = vmatpush1.bf16.msra.mxu1 %v3329_v28 }
 0x32a   : > { %2432 = vmatprep.subr.bf16.mxu1 %v3334_v30 }
 0x32d   : > { %2433 = vmatpush1.bf16.msra.mxu1 %v3332_v31 }
 0x32e   : > { %2434 = vmatprep.subr.bf16.mxu1 %v3337_v32 }
 0x331   : > { %2435 = vmatpush1.bf16.msra.mxu1 %v3335_v34 }
 0x332   : > { %2436 = vmatprep.subr.bf16.mxu1 %v3340_v37 }
 0x335   : > { %2437 = vmatpush1.bf16.msra.mxu1 %v3338_v35 }
 0x336   : > { %2438 = vmatprep.subr.bf16.mxu1 %v3343_v36 }
 0x339   : > { %2439 = vmatpush1.bf16.msra.mxu1 %v3341_v38 }
 0x33a   : > { %2440 = vmatprep.subr.bf16.mxu1 %v3346_v39 }
 0x33d   : > { %2441 = vmatpush1.bf16.msra.mxu1 %v3344_v41 }
 0x33e   : > { %2442 = vmatprep.subr.bf16.mxu1 %v3349_v42 }
 0x341   : > { %2443 = vmatpush1.bf16.msra.mxu1 %v3347_v44 }
 0x342   : > { %2444 = vmatprep.subr.bf16.mxu1 %v3352_v46 }
 0x345   : > { %2445 = vmatpush1.bf16.msra.mxu1 %v3350_v49 }
 0x346   : > { %2446 = vmatprep.subr.bf16.mxu1 %v3355_v40 }
 0x349   : > { %2447 = vmatpush1.bf16.msra.mxu1 %v3353_v50 }
 0x34a   : > { %2448 = vmatprep.subr.bf16.mxu1 %v3358_v51 }
 0x34d   : > { %2449 = vmatpush1.bf16.msra.mxu1 %v3356_v52 }
 0x34e   : > { %2450 = vmatprep.subr.bf16.mxu1 %v3361_v54 }
 0x351   : > { %2451 = vmatpush1.bf16.msra.mxu1 %v3359_v56 }
 0x352   : > { %2452 = vmatprep.subr.bf16.mxu1 %v3364_v57 }
 0x355   : > { %2453 = vmatpush1.bf16.msra.mxu1 %v3362_v58 }
 0x356   : > { %2454 = vmatprep.subr.bf16.mxu1 %v3367_v59 }
 0x359   : > { %2455 = vmatpush1.bf16.msra.mxu1 %v3365_v60 }
 0x35c   : > { %2457 = vmatmul.mubr.bf16.vlgmr.msra.gmra.mrb[4].mxu1 %v4014_v18 }
 0x42f   : > { %v2458_v2 = vpop.f32.mrb[4].mxu1 }
 0x430   : > { %v2479_v47 = vadd.f32 %v2472_v62, %v2458_v2  ;;  %v2460_v3 = vpop.f32.mrb[5].mxu1 }
 0x431   : > { %v2480_v5 = vadd.f32 %v2476_v0, %v2460_v3  ;;  %v2462_v16 = vpop.f32.mrb[6].mxu1 }
 0x432   : > { %2561 = vst [vmem:[#allocation2] sm:$0xff] %v2479_v47  ;;  %2564 = vst [vmem:[%s3901_s14] sm:$0xff] %v2479_v47  ;;  %v2481_v29 = vmul.f32 %v3368_v23, %v2462_v16  ;;  %v2464_v33 = vpop.f32.mrb[7].mxu1 }
 0x433   : > { %2562 = vst [vmem:[#allocation2 + $0x8] sm:$0xff] %v2480_v5  ;;  %2565 = vst [vmem:[%s3901_s14 + $0x8] sm:$0xff] %v2480_v5  ;;  %v2482_v43 = vmul.f32 %v3369_v11, %v2464_v33  ;;  %2553 = vmatprep.mubr.f32.mxu0 %v2480_v5 }
 0x434   : > { %2554 = vmatmul.mubr.f32.vlgmr.msra.gmra.mrb[2].mxu0 %v2479_v47 }
 0x435   : > { %v2483_v10 = vadd.f32 %v2482_v43, %v2481_v29 }
 0x437   : > { %2484 = vadd.xlane.f32.xlu0 %v2483_v10 }
 0x438   : > { %3526 = shalt.err (!%p3523_p7)
}
 0x439   : > { %s3527_s27 = scalar_lea.hbm %s4034_s17, 256  ;;  %s3531_s30 = scalar_lea.hbm %s4084_s7, 768 }
 0x43a   : > { %p3528_p12 = scmp.ne.s32.totalorder %s4034_s17, %s3527_s27  ;;  %p3532_p3 = scmp.lt.u32.totalorder %s4034_s17, %s4084_s7 }
 0x43b   : > { %p3533_p5 = scmp.lt.u32.totalorder %s3531_s30, %s3527_s27  ;;  %p3535_p6 = scmp.lt.u32.totalorder %s3527_s27, %s4034_s17 }
 0x43c   : > { %p3529_p13 = pnand %p3528_p12, %p4111_p8 }
 0x43d   : > { %p3534_p0 = por %p3533_p5, %p3532_p3 }
 0x43e   : > { %p3530_p11 = pneg %p3529_p13 }
 0x43f   : > { %p3536_p9 = por %p3535_p6, %p3534_p0 }
 0x441   : > { %p3537_p1 = pnand %p3536_p9, %p3530_p11 }
 0x443   : > { %3540 = shalt.err (!%p3537_p1)
}
 0x444   : > { %3083 = dma.vmem_to_hbm [thread:$0]  (%p4111_p8), %s2584_s21, 256, %s4034_s17, %s2567_s2   ;;  %v382_v55 = vld [vmem:[#allocation4] sm:$0xff]  ;;  %v3370_v1 = vld [vmem:[#allocation3] sm:$0xff] }
 0x4c4   : > { %v2485_v22 = vpop.xlane.xlu0 %2484 }
 0x4c5   : > { %v2486_v45 = vmul.f32 100.0, %v2485_v22 }
 0x4c7   : > { %v2487_v53 = vmul.f32 0.015625, %v2486_v45 }
 0x4c9   : > { %v2488_v12 = vmul.f32 %v3370_v1, %v2487_v53 }
 0x507   : > { %v2555_v63 = vpop.f32.mrb[2].mxu0 }
 0x508   : > { %v2559_v48 = vsub.f32 %v382_v55, %v2555_v63  ;;  %v2557_v4 = vpop.f32.mrb[3].mxu0 }
 0x50a   : > { %v2560_v6 = vadd.f32 %v2559_v48, %v2488_v12 }
 0x50c   : > { %2563 = vst [vmem:[#allocation3] sm:$0xff] %v2560_v6 }
 0x50d PF: > { %p3115_p4 = scmp.ge.s32.totalorder %s3607_s29, 2  ;;  %s2595_s15 = sand.u32 1, %s3587_s24  }
 0x50e   : > { %p4112_p10 = scmp.ne.s32.totalorder %s4102_s10, 0  ;;  %s2596_s20 = scalar_lea.sflag [#allocation6], %s2595_s15 }
 0x510   : > { %p3103_p2 = pnand %p3115_p4, %p4112_p10 }
 0x512   : > { %3582 = dma.done.wait (!%p3103_p2), %s2596_s20, 256  }
 0x513   : > { %3584 = vsyncadd (!%p3103_p2), %s2596_s20, 4294967040  ;;  %s23_s29 = sadd.s32 1, %s3607_s29   ;;  %s4113_s24 = smov %s3591_s25 }
 0x514   : > { %p20_p8 = scmp.ge.s32.totalorder %s23_s29, 5   ;;  %s4114_s25 = smov %s3595_s26 }
 0x515   : > { %s4115_s26 = smov %s3831_s23  ;;  %s4116_s27 = smov %s3603_s28 }
 0x516   : > { %s4117_s28 = smov %s4119_s16  ;;  %22 = sbr.rel (!%p20_p8) target bundleno = 11 (0xb), region = 113 }
 0x51d   :  { %2601 = vsyncpa [#allocation5], 1 }
 0x51e   :  { %2603 = vsyncpa [#allocation5 + $0x1], 1 }
 0x51f   :  { %2604 = vsyncpa [#allocation8], 1 }
 0x520   :  { %2605 = vsyncpa [#allocation11], 1 }
 0x521   :  { %2606 = vsyncpa [#allocation6], 1 }
 0x522   :  { %2608 = vsyncpa [#allocation6 + $0x1], 1 }

</bundles_post_ra>
